<compile_context>
chip_gen: v7x
topology: tpu7x:2x2x1
jax: 0.10.0
libtpu: 0.0.40
codegen_flags: <defaults>
</compile_context>

<pallas_src>
import jax
import jax.numpy as jnp
from jax import lax
from jax.experimental import pallas as pl
from jax.experimental.pallas import tpu as pltpu

EPS = 1e-5
H = W = 7
HW = H * W                    # 49 true spatial positions
ROWS = 56                     # 49 padded to 7 full (8-row) sublane groups
CIN = 128
COUT = 32
C_PRE = 1280                  # 640 + 20 * 32 channels before the conv output
C_POST = 32                   # x523
CTOT = C_PRE + COUT + C_POST  # 1344
C_PAD = 1408                  # 11 * 128: lane-dense output width
K_IM2COL = 9 * CIN            # 1152
PRE_CHUNK = 256               # lanes per streamed BN chunk over `pre`
INV_N = 1.0 / float(HW)       # stats divide by the true count (49), not ROWS


def fused_kernel(patch_ref, w_ref, pre_ref, post_ref, gamma_ref, beta_ref, out_ref):
    # ---- Conv2d(128->32, 3x3, pad 1, no bias): one im2col MXU matmul ----
    # bf16 operands, f32 accumulation. Padded patch rows are zero -> conv rows
    # 49:56 are zero and contribute nothing to the BN statistics.
    conv = jnp.dot(patch_ref[...], w_ref[...],
                   preferred_element_type=jnp.float32)            # (56, 32) f32

    # ---- BatchNorm over the 1280 pre-concat channels, 256-lane chunks ----
    # mean = sum/49, var = sumsq/49 - mean^2 ; folded into scale/shift so the
    # elementwise pass is a single mul+add per element. No (49,1344) concat.
    for c0 in range(0, C_PRE, PRE_CHUNK):
        x = pre_ref[:, c0:c0 + PRE_CHUNK]                          # (56, 256)
        s = jnp.sum(x, axis=0, keepdims=True)
        sq = jnp.sum(x * x, axis=0, keepdims=True)
        mean = s * INV_N
        var = sq * INV_N - mean * mean
        scale = gamma_ref[:, c0:c0 + PRE_CHUNK] * lax.rsqrt(var + EPS)
        shift = beta_ref[:, c0:c0 + PRE_CHUNK] - mean * scale
        out_ref[:, c0:c0 + PRE_CHUNK] = x * scale + shift

    # ---- Tail: conv output (32) + x523 (32), normalized together and written
    #      with the 64 padding lanes as ONE lane-dense 128-wide store. ----
    tail = jnp.concatenate([conv, post_ref[...]], axis=1)          # (56, 64)
    s = jnp.sum(tail, axis=0, keepdims=True)
    sq = jnp.sum(tail * tail, axis=0, keepdims=True)
    mean = s * INV_N
    var = sq * INV_N - mean * mean
    scale = gamma_ref[:, C_PRE:CTOT] * lax.rsqrt(var + EPS)
    shift = beta_ref[:, C_PRE:CTOT] - mean * scale
    tail_out = tail * scale + shift                                # (56, 64)
    out_ref[:, C_PRE:C_PAD] = jnp.concatenate(
        [tail_out, jnp.zeros((ROWS, C_PAD - CTOT), jnp.float32)], axis=1)


def model_forward(x515, pre_tensors, x523, conv_w_oihw, gamma, beta):
    """pre_tensors: the 21 NCHW tensors preceding the conv output in the concat."""
    pad_rows = ROWS - HW

    # pre: single concat + transpose to channels-last (49,1280), rows -> 56
    pre_c = jnp.concatenate([t[0] for t in pre_tensors], axis=0)   # (1280, 7, 7)
    pre = jnp.transpose(pre_c.reshape(C_PRE, HW))                  # (49, 1280)
    pre = jnp.pad(pre, ((0, pad_rows), (0, 0)))                    # (56, 1280)

    # im2col patches: (49, 9*128), rows -> 56, bf16 for the MXU
    xhwc = jnp.transpose(x515[0], (1, 2, 0))                       # (7, 7, 128)
    xpad = jnp.pad(xhwc, ((1, 1), (1, 1), (0, 0)))                 # (9, 9, 128)
    cols = [xpad[kh:kh + H, kw:kw + W, :].reshape(HW, CIN)
            for kh in range(3) for kw in range(3)]
    patch = jnp.concatenate(cols, axis=1)                          # (49, 1152)
    patch = jnp.pad(patch, ((0, pad_rows), (0, 0))).astype(jnp.bfloat16)

    # weight (O,I,kh,kw) -> (kh,kw,I,O) -> (1152, 32), matching patch column order
    w = jnp.transpose(conv_w_oihw, (2, 3, 1, 0)).reshape(K_IM2COL, COUT)
    w = w.astype(jnp.bfloat16)

    post = jnp.transpose(x523[0].reshape(C_POST, HW))              # (49, 32)
    post = jnp.pad(post, ((0, pad_rows), (0, 0)))                  # (56, 32)

    vmem = pl.BlockSpec(memory_space=pltpu.MemorySpace.VMEM)
    out = pl.pallas_call(
        fused_kernel,
        out_shape=jax.ShapeDtypeStruct((ROWS, C_PAD), jnp.float32),
        in_specs=[vmem] * 6,
        out_specs=vmem,
    )(patch, w, pre, post, gamma.reshape(1, CTOT), beta.reshape(1, CTOT))

    out = out[:HW, :CTOT]                                          # (49, 1344)
    return jnp.transpose(out.reshape(H, W, CTOT), (2, 0, 1))[None]  # (1,1344,7,7)


if __name__ == "__main__":
    key = jax.random.PRNGKey(0)
    keys = jax.random.split(key, 26)

    x369 = jax.random.normal(keys[0], (1, 640, H, W), jnp.float32)
    small = [jax.random.normal(keys[1 + i], (1, 32, H, W), jnp.float32)
             for i in range(20)]  # x376 .. x509
    x515 = jax.random.normal(keys[21], (1, 128, H, W), jnp.float32)
    x523 = jax.random.normal(keys[22], (1, 32, H, W), jnp.float32)

    # deterministic parameters (Conv2d weight OIHW; non-trivial BN affine)
    conv_w = jax.random.normal(keys[23], (COUT, CIN, 3, 3), jnp.float32) * 0.05
    gamma = 1.0 + 0.1 * jax.random.normal(keys[24], (CTOT,), jnp.float32)
    beta = 0.1 * jax.random.normal(keys[25], (CTOT,), jnp.float32)

    pre_tensors = [x369] + small  # 640 + 20*32 = 1280 channels before conv output

    out = model_forward(x515, pre_tensors, x523, conv_w, gamma, beta)
    out = jax.block_until_ready(out)

    # reference (pure JAX, f32 conv) for sanity
    conv_ref = lax.conv_general_dilated(
        x515, conv_w, (1, 1), ((1, 1), (1, 1)),
        dimension_numbers=("NCHW", "OIHW", "NCHW"))
    cat = jnp.concatenate(pre_tensors + [conv_ref, x523], axis=1)
    mean = cat.mean(axis=(0, 2, 3), keepdims=True)
    var = ((cat - mean) ** 2).mean(axis=(0, 2, 3), keepdims=True)
    ref = (cat - mean) / jnp.sqrt(var + EPS) * gamma.reshape(1, -1, 1, 1) \
          + beta.reshape(1, -1, 1, 1)

    assert out.shape == (1, CTOT, H, W), out.shape
    # bf16 MXU operands (per v6e/v7x guidance) add ~5e-3 error in the
    # BN-normalized conv channels vs. the f32 reference; 1e-2 covers it.
    assert jnp.allclose(out, ref, atol=1e-2, rtol=1e-2), \
        float(jnp.max(jnp.abs(out - ref)))
    print("KERNEL_OK")
</pallas_src>

<mosaic_0001>
module attributes {stable_mosaic.version = 11 : i64} {
  func.func @fused_kernel(%arg0: memref<56x1152xbf16, #tpu.memory_space<vmem>>, %arg1: memref<1152x32xbf16, #tpu.memory_space<vmem>>, %arg2: memref<56x1280xf32, #tpu.memory_space<vmem>>, %arg3: memref<56x32xf32, #tpu.memory_space<vmem>>, %arg4: memref<1x1344xf32, #tpu.memory_space<vmem>>, %arg5: memref<1x1344xf32, #tpu.memory_space<vmem>>, %arg6: memref<56x1408xf32, #tpu.memory_space<vmem>>) attributes {dimension_semantics = [], scalar_prefetch = 0 : i64, scratch_operands = 0 : i64, tpu.core_type = #tpu.core_type<tc>} {
    %c0 = arith.constant 0 : index
    %c0_0 = arith.constant 0 : index
    %0 = vector.load %arg0[%c0, %c0_0] : memref<56x1152xbf16, #tpu.memory_space<vmem>>, vector<56x1152xbf16>
    %c0_1 = arith.constant 0 : index
    %c0_2 = arith.constant 0 : index
    %1 = vector.load %arg1[%c0_1, %c0_2] : memref<1152x32xbf16, #tpu.memory_space<vmem>>, vector<1152x32xbf16>
    %cst = arith.constant dense<0.000000e+00> : vector<56x32xf32>
    %2 = tpu.matmul %0, %1, %cst {dimension_numbers = #tpu.dot_dimension_numbers<[1], [0], [0], [1], [0, 0, 1, 1], [], []>} : vector<56x1152xbf16>, vector<1152x32xbf16>, vector<56x32xf32> -> vector<56x32xf32>
    %c0_3 = arith.constant 0 : index
    %c0_4 = arith.constant 0 : index
    %3 = vector.load %arg2[%c0_3, %c0_4] : memref<56x1280xf32, #tpu.memory_space<vmem>>, vector<56x256xf32>
    %cst_5 = arith.constant dense<0.000000e+00> : vector<256xf32>
    %4 = vector.multi_reduction <add>, %3, %cst_5 [0] : vector<56x256xf32> to vector<256xf32>
    %5 = vector.shape_cast %4 : vector<256xf32> to vector<1x256xf32>
    %6 = arith.mulf %3, %3 : vector<56x256xf32>
    %cst_6 = arith.constant dense<0.000000e+00> : vector<256xf32>
    %7 = vector.multi_reduction <add>, %6, %cst_6 [0] : vector<56x256xf32> to vector<256xf32>
    %8 = vector.shape_cast %7 : vector<256xf32> to vector<1x256xf32>
    %cst_7 = arith.constant 0.0204081628 : f32
    %9 = vector.broadcast %cst_7 : f32 to vector<1x256xf32>
    %10 = arith.mulf %5, %9 : vector<1x256xf32>
    %cst_8 = arith.constant 0.0204081628 : f32
    %11 = vector.broadcast %cst_8 : f32 to vector<1x256xf32>
    %12 = arith.mulf %8, %11 : vector<1x256xf32>
    %13 = arith.mulf %10, %10 : vector<1x256xf32>
    %14 = arith.subf %12, %13 : vector<1x256xf32>
    %c0_9 = arith.constant 0 : index
    %c0_10 = arith.constant 0 : index
    %15 = vector.load %arg4[%c0_9, %c0_10] : memref<1x1344xf32, #tpu.memory_space<vmem>>, vector<1x256xf32>
    %cst_11 = arith.constant 9.99999974E-6 : f32
    %16 = vector.broadcast %cst_11 : f32 to vector<1x256xf32>
    %17 = arith.addf %14, %16 : vector<1x256xf32>
    %18 = math.rsqrt %17 : vector<1x256xf32>
    %19 = arith.mulf %15, %18 : vector<1x256xf32>
    %c0_12 = arith.constant 0 : index
    %c0_13 = arith.constant 0 : index
    %20 = vector.load %arg5[%c0_12, %c0_13] : memref<1x1344xf32, #tpu.memory_space<vmem>>, vector<1x256xf32>
    %21 = arith.mulf %10, %19 : vector<1x256xf32>
    %22 = arith.subf %20, %21 : vector<1x256xf32>
    %23 = vector.broadcast %19 : vector<1x256xf32> to vector<56x256xf32>
    %24 = arith.mulf %3, %23 : vector<56x256xf32>
    %25 = vector.broadcast %22 : vector<1x256xf32> to vector<56x256xf32>
    %26 = arith.addf %24, %25 : vector<56x256xf32>
    %c0_14 = arith.constant 0 : index
    %c0_15 = arith.constant 0 : index
    %27 = vector.load %arg6[%c0_14, %c0_15] : memref<56x1408xf32, #tpu.memory_space<vmem>>, vector<56x256xf32>
    tpu.vector_store %arg6[%c0_14, %c0_15], %26 {strides = array<i32>} : memref<56x1408xf32, #tpu.memory_space<vmem>>, vector<56x256xf32>,
    %c0_16 = arith.constant 0 : index
    %c256 = arith.constant 256 : index
    %28 = vector.load %arg2[%c0_16, %c256] : memref<56x1280xf32, #tpu.memory_space<vmem>>, vector<56x256xf32>
    %cst_17 = arith.constant dense<0.000000e+00> : vector<256xf32>
    %29 = vector.multi_reduction <add>, %28, %cst_17 [0] : vector<56x256xf32> to vector<256xf32>
    %30 = vector.shape_cast %29 : vector<256xf32> to vector<1x256xf32>
    %31 = arith.mulf %28, %28 : vector<56x256xf32>
    %cst_18 = arith.constant dense<0.000000e+00> : vector<256xf32>
    %32 = vector.multi_reduction <add>, %31, %cst_18 [0] : vector<56x256xf32> to vector<256xf32>
    %33 = vector.shape_cast %32 : vector<256xf32> to vector<1x256xf32>
    %cst_19 = arith.constant 0.0204081628 : f32
    %34 = vector.broadcast %cst_19 : f32 to vector<1x256xf32>
    %35 = arith.mulf %30, %34 : vector<1x256xf32>
    %cst_20 = arith.constant 0.0204081628 : f32
    %36 = vector.broadcast %cst_20 : f32 to vector<1x256xf32>
    %37 = arith.mulf %33, %36 : vector<1x256xf32>
    %38 = arith.mulf %35, %35 : vector<1x256xf32>
    %39 = arith.subf %37, %38 : vector<1x256xf32>
    %c0_21 = arith.constant 0 : index
    %c256_22 = arith.constant 256 : index
    %40 = vector.load %arg4[%c0_21, %c256_22] : memref<1x1344xf32, #tpu.memory_space<vmem>>, vector<1x256xf32>
    %cst_23 = arith.constant 9.99999974E-6 : f32
    %41 = vector.broadcast %cst_23 : f32 to vector<1x256xf32>
    %42 = arith.addf %39, %41 : vector<1x256xf32>
    %43 = math.rsqrt %42 : vector<1x256xf32>
    %44 = arith.mulf %40, %43 : vector<1x256xf32>
    %c0_24 = arith.constant 0 : index
    %c256_25 = arith.constant 256 : index
    %45 = vector.load %arg5[%c0_24, %c256_25] : memref<1x1344xf32, #tpu.memory_space<vmem>>, vector<1x256xf32>
    %46 = arith.mulf %35, %44 : vector<1x256xf32>
    %47 = arith.subf %45, %46 : vector<1x256xf32>
    %48 = vector.broadcast %44 : vector<1x256xf32> to vector<56x256xf32>
    %49 = arith.mulf %28, %48 : vector<56x256xf32>
    %50 = vector.broadcast %47 : vector<1x256xf32> to vector<56x256xf32>
    %51 = arith.addf %49, %50 : vector<56x256xf32>
    %c0_26 = arith.constant 0 : index
    %c256_27 = arith.constant 256 : index
    %52 = vector.load %arg6[%c0_26, %c256_27] : memref<56x1408xf32, #tpu.memory_space<vmem>>, vector<56x256xf32>
    tpu.vector_store %arg6[%c0_26, %c256_27], %51 {strides = array<i32>} : memref<56x1408xf32, #tpu.memory_space<vmem>>, vector<56x256xf32>,
    %c0_28 = arith.constant 0 : index
    %c512 = arith.constant 512 : index
    %53 = vector.load %arg2[%c0_28, %c512] : memref<56x1280xf32, #tpu.memory_space<vmem>>, vector<56x256xf32>
    %cst_29 = arith.constant dense<0.000000e+00> : vector<256xf32>
    %54 = vector.multi_reduction <add>, %53, %cst_29 [0] : vector<56x256xf32> to vector<256xf32>
    %55 = vector.shape_cast %54 : vector<256xf32> to vector<1x256xf32>
    %56 = arith.mulf %53, %53 : vector<56x256xf32>
    %cst_30 = arith.constant dense<0.000000e+00> : vector<256xf32>
    %57 = vector.multi_reduction <add>, %56, %cst_30 [0] : vector<56x256xf32> to vector<256xf32>
    %58 = vector.shape_cast %57 : vector<256xf32> to vector<1x256xf32>
    %cst_31 = arith.constant 0.0204081628 : f32
    %59 = vector.broadcast %cst_31 : f32 to vector<1x256xf32>
    %60 = arith.mulf %55, %59 : vector<1x256xf32>
    %cst_32 = arith.constant 0.0204081628 : f32
    %61 = vector.broadcast %cst_32 : f32 to vector<1x256xf32>
    %62 = arith.mulf %58, %61 : vector<1x256xf32>
    %63 = arith.mulf %60, %60 : vector<1x256xf32>
    %64 = arith.subf %62, %63 : vector<1x256xf32>
    %c0_33 = arith.constant 0 : index
    %c512_34 = arith.constant 512 : index
    %65 = vector.load %arg4[%c0_33, %c512_34] : memref<1x1344xf32, #tpu.memory_space<vmem>>, vector<1x256xf32>
    %cst_35 = arith.constant 9.99999974E-6 : f32
    %66 = vector.broadcast %cst_35 : f32 to vector<1x256xf32>
    %67 = arith.addf %64, %66 : vector<1x256xf32>
    %68 = math.rsqrt %67 : vector<1x256xf32>
    %69 = arith.mulf %65, %68 : vector<1x256xf32>
    %c0_36 = arith.constant 0 : index
    %c512_37 = arith.constant 512 : index
    %70 = vector.load %arg5[%c0_36, %c512_37] : memref<1x1344xf32, #tpu.memory_space<vmem>>, vector<1x256xf32>
    %71 = arith.mulf %60, %69 : vector<1x256xf32>
    %72 = arith.subf %70, %71 : vector<1x256xf32>
    %73 = vector.broadcast %69 : vector<1x256xf32> to vector<56x256xf32>
    %74 = arith.mulf %53, %73 : vector<56x256xf32>
    %75 = vector.broadcast %72 : vector<1x256xf32> to vector<56x256xf32>
    %76 = arith.addf %74, %75 : vector<56x256xf32>
    %c0_38 = arith.constant 0 : index
    %c512_39 = arith.constant 512 : index
    %77 = vector.load %arg6[%c0_38, %c512_39] : memref<56x1408xf32, #tpu.memory_space<vmem>>, vector<56x256xf32>
    tpu.vector_store %arg6[%c0_38, %c512_39], %76 {strides = array<i32>} : memref<56x1408xf32, #tpu.memory_space<vmem>>, vector<56x256xf32>,
    %c0_40 = arith.constant 0 : index
    %c768 = arith.constant 768 : index
    %78 = vector.load %arg2[%c0_40, %c768] : memref<56x1280xf32, #tpu.memory_space<vmem>>, vector<56x256xf32>
    %cst_41 = arith.constant dense<0.000000e+00> : vector<256xf32>
    %79 = vector.multi_reduction <add>, %78, %cst_41 [0] : vector<56x256xf32> to vector<256xf32>
    %80 = vector.shape_cast %79 : vector<256xf32> to vector<1x256xf32>
    %81 = arith.mulf %78, %78 : vector<56x256xf32>
    %cst_42 = arith.constant dense<0.000000e+00> : vector<256xf32>
    %82 = vector.multi_reduction <add>, %81, %cst_42 [0] : vector<56x256xf32> to vector<256xf32>
    %83 = vector.shape_cast %82 : vector<256xf32> to vector<1x256xf32>
    %cst_43 = arith.constant 0.0204081628 : f32
    %84 = vector.broadcast %cst_43 : f32 to vector<1x256xf32>
    %85 = arith.mulf %80, %84 : vector<1x256xf32>
    %cst_44 = arith.constant 0.0204081628 : f32
    %86 = vector.broadcast %cst_44 : f32 to vector<1x256xf32>
    %87 = arith.mulf %83, %86 : vector<1x256xf32>
    %88 = arith.mulf %85, %85 : vector<1x256xf32>
    %89 = arith.subf %87, %88 : vector<1x256xf32>
    %c0_45 = arith.constant 0 : index
    %c768_46 = arith.constant 768 : index
    %90 = vector.load %arg4[%c0_45, %c768_46] : memref<1x1344xf32, #tpu.memory_space<vmem>>, vector<1x256xf32>
    %cst_47 = arith.constant 9.99999974E-6 : f32
    %91 = vector.broadcast %cst_47 : f32 to vector<1x256xf32>
    %92 = arith.addf %89, %91 : vector<1x256xf32>
    %93 = math.rsqrt %92 : vector<1x256xf32>
    %94 = arith.mulf %90, %93 : vector<1x256xf32>
    %c0_48 = arith.constant 0 : index
    %c768_49 = arith.constant 768 : index
    %95 = vector.load %arg5[%c0_48, %c768_49] : memref<1x1344xf32, #tpu.memory_space<vmem>>, vector<1x256xf32>
    %96 = arith.mulf %85, %94 : vector<1x256xf32>
    %97 = arith.subf %95, %96 : vector<1x256xf32>
    %98 = vector.broadcast %94 : vector<1x256xf32> to vector<56x256xf32>
    %99 = arith.mulf %78, %98 : vector<56x256xf32>
    %100 = vector.broadcast %97 : vector<1x256xf32> to vector<56x256xf32>
    %101 = arith.addf %99, %100 : vector<56x256xf32>
    %c0_50 = arith.constant 0 : index
    %c768_51 = arith.constant 768 : index
    %102 = vector.load %arg6[%c0_50, %c768_51] : memref<56x1408xf32, #tpu.memory_space<vmem>>, vector<56x256xf32>
    tpu.vector_store %arg6[%c0_50, %c768_51], %101 {strides = array<i32>} : memref<56x1408xf32, #tpu.memory_space<vmem>>, vector<56x256xf32>,
    %c0_52 = arith.constant 0 : index
    %c1024 = arith.constant 1024 : index
    %103 = vector.load %arg2[%c0_52, %c1024] : memref<56x1280xf32, #tpu.memory_space<vmem>>, vector<56x256xf32>
    %cst_53 = arith.constant dense<0.000000e+00> : vector<256xf32>
    %104 = vector.multi_reduction <add>, %103, %cst_53 [0] : vector<56x256xf32> to vector<256xf32>
    %105 = vector.shape_cast %104 : vector<256xf32> to vector<1x256xf32>
    %106 = arith.mulf %103, %103 : vector<56x256xf32>
    %cst_54 = arith.constant dense<0.000000e+00> : vector<256xf32>
    %107 = vector.multi_reduction <add>, %106, %cst_54 [0] : vector<56x256xf32> to vector<256xf32>
    %108 = vector.shape_cast %107 : vector<256xf32> to vector<1x256xf32>
    %cst_55 = arith.constant 0.0204081628 : f32
    %109 = vector.broadcast %cst_55 : f32 to vector<1x256xf32>
    %110 = arith.mulf %105, %109 : vector<1x256xf32>
    %cst_56 = arith.constant 0.0204081628 : f32
    %111 = vector.broadcast %cst_56 : f32 to vector<1x256xf32>
    %112 = arith.mulf %108, %111 : vector<1x256xf32>
    %113 = arith.mulf %110, %110 : vector<1x256xf32>
    %114 = arith.subf %112, %113 : vector<1x256xf32>
    %c0_57 = arith.constant 0 : index
    %c1024_58 = arith.constant 1024 : index
    %115 = vector.load %arg4[%c0_57, %c1024_58] : memref<1x1344xf32, #tpu.memory_space<vmem>>, vector<1x256xf32>
    %cst_59 = arith.constant 9.99999974E-6 : f32
    %116 = vector.broadcast %cst_59 : f32 to vector<1x256xf32>
    %117 = arith.addf %114, %116 : vector<1x256xf32>
    %118 = math.rsqrt %117 : vector<1x256xf32>
    %119 = arith.mulf %115, %118 : vector<1x256xf32>
    %c0_60 = arith.constant 0 : index
    %c1024_61 = arith.constant 1024 : index
    %120 = vector.load %arg5[%c0_60, %c1024_61] : memref<1x1344xf32, #tpu.memory_space<vmem>>, vector<1x256xf32>
    %121 = arith.mulf %110, %119 : vector<1x256xf32>
    %122 = arith.subf %120, %121 : vector<1x256xf32>
    %123 = vector.broadcast %119 : vector<1x256xf32> to vector<56x256xf32>
    %124 = arith.mulf %103, %123 : vector<56x256xf32>
    %125 = vector.broadcast %122 : vector<1x256xf32> to vector<56x256xf32>
    %126 = arith.addf %124, %125 : vector<56x256xf32>
    %c0_62 = arith.constant 0 : index
    %c1024_63 = arith.constant 1024 : index
    %127 = vector.load %arg6[%c0_62, %c1024_63] : memref<56x1408xf32, #tpu.memory_space<vmem>>, vector<56x256xf32>
    tpu.vector_store %arg6[%c0_62, %c1024_63], %126 {strides = array<i32>} : memref<56x1408xf32, #tpu.memory_space<vmem>>, vector<56x256xf32>,
    %c0_64 = arith.constant 0 : index
    %c0_65 = arith.constant 0 : index
    %128 = vector.load %arg3[%c0_64, %c0_65] : memref<56x32xf32, #tpu.memory_space<vmem>>, vector<56x32xf32>
    %129 = tpu.concatenate %2, %128 in 1 : vector<56x32xf32>, vector<56x32xf32> -> vector<56x64xf32>
    %cst_66 = arith.constant dense<0.000000e+00> : vector<64xf32>
    %130 = vector.multi_reduction <add>, %129, %cst_66 [0] : vector<56x64xf32> to vector<64xf32>
    %131 = vector.shape_cast %130 : vector<64xf32> to vector<1x64xf32>
    %132 = arith.mulf %129, %129 : vector<56x64xf32>
    %cst_67 = arith.constant dense<0.000000e+00> : vector<64xf32>
    %133 = vector.multi_reduction <add>, %132, %cst_67 [0] : vector<56x64xf32> to vector<64xf32>
    %134 = vector.shape_cast %133 : vector<64xf32> to vector<1x64xf32>
    %cst_68 = arith.constant 0.0204081628 : f32
    %135 = vector.broadcast %cst_68 : f32 to vector<1x64xf32>
    %136 = arith.mulf %131, %135 : vector<1x64xf32>
    %cst_69 = arith.constant 0.0204081628 : f32
    %137 = vector.broadcast %cst_69 : f32 to vector<1x64xf32>
    %138 = arith.mulf %134, %137 : vector<1x64xf32>
    %139 = arith.mulf %136, %136 : vector<1x64xf32>
    %140 = arith.subf %138, %139 : vector<1x64xf32>
    %c0_70 = arith.constant 0 : index
    %c1280 = arith.constant 1280 : index
    %141 = vector.load %arg4[%c0_70, %c1280] : memref<1x1344xf32, #tpu.memory_space<vmem>>, vector<1x64xf32>
    %cst_71 = arith.constant 9.99999974E-6 : f32
    %142 = vector.broadcast %cst_71 : f32 to vector<1x64xf32>
    %143 = arith.addf %140, %142 : vector<1x64xf32>
    %144 = math.rsqrt %143 : vector<1x64xf32>
    %145 = arith.mulf %141, %144 : vector<1x64xf32>
    %c0_72 = arith.constant 0 : index
    %c1280_73 = arith.constant 1280 : index
    %146 = vector.load %arg5[%c0_72, %c1280_73] : memref<1x1344xf32, #tpu.memory_space<vmem>>, vector<1x64xf32>
    %147 = arith.mulf %136, %145 : vector<1x64xf32>
    %148 = arith.subf %146, %147 : vector<1x64xf32>
    %149 = vector.broadcast %145 : vector<1x64xf32> to vector<56x64xf32>
    %150 = arith.mulf %129, %149 : vector<56x64xf32>
    %151 = vector.broadcast %148 : vector<1x64xf32> to vector<56x64xf32>
    %152 = arith.addf %150, %151 : vector<56x64xf32>
    %cst_74 = arith.constant 0.000000e+00 : f32
    %153 = vector.broadcast %cst_74 : f32 to vector<56x64xf32>
    %154 = tpu.concatenate %152, %153 in 1 : vector<56x64xf32>, vector<56x64xf32> -> vector<56x128xf32>
    %c0_75 = arith.constant 0 : index
    %c1280_76 = arith.constant 1280 : index
    %155 = vector.load %arg6[%c0_75, %c1280_76] : memref<56x1408xf32, #tpu.memory_space<vmem>>, vector<56x128xf32>
    tpu.vector_store %arg6[%c0_75, %c1280_76], %154 {strides = array<i32>} : memref<56x1408xf32, #tpu.memory_space<vmem>>, vector<56x128xf32>,
    return
  }
}

</mosaic_0001>

<bundles_post_ra>
// kernel: tpu_custom_call.1
= control target key start
LH: loop header
LB: loop body
LE: loop exit
PB: predicated region body
PF: predicated region fallthrough
CT: control target
= control target key end

     0   :  { %11 = vsyncpa [#allocation3], 0  ;;  %s4182_s0 = inlined_call_operand.vmem [shape: bf16[56,1152], index: 0, kind: input, shape index: {}]   ;;  %s4183_s1 = inlined_call_operand.vmem [shape: bf16[1152,32], index: 1, kind: input, shape index: {}]   ;;  %s4184_s2 = inlined_call_operand.vmem [shape: f32[56,1280], index: 2, kind: input, shape index: {}]   ;;  %s4185_s3 = inlined_call_operand.vmem [shape: f32[56,32], index: 3, kind: input, shape index: {}]   ;;  %s4186_s4 = inlined_call_operand.hbm [shape: f32[1,1344], index: 4, kind: input, shape index: {}]   ;;  %s4187_s5 = inlined_call_operand.hbm [shape: f32[1,1344], index: 5, kind: input, shape index: {}]   ;;  %s4188_s6 = inlined_call_operand.hbm [shape: f32[56,1408], index: 6, kind: output, shape index: {}]  }
   0x1   :  { %12 = vsyncpa [#allocation6], 0 }
   0x2   :  { %13 = vsyncpa [#allocation4], 0  ;;  %s2828_s21 = smov [#allocation2]   ;;  %s2829_s23 = smov [#allocation5]  }
   0x3   :  { %s28_s22 = sshll.u32 %s2828_s21, 4  ;;  %s38_s24 = sshll.u32 %s2829_s23, 4  ;;  %s29_s22 = int_to_ptr.vmem [resolvable:$true] %s28_s22  ;;  %s39_s24 = int_to_ptr.vmem [resolvable:$true] %s38_s24 }
   0x4   :  { %s2756_s27 = scalar_lea.hbm %s4186_s4, 176 }
   0x5   :  { %p2757_p0 = scmp.ne.s32.totalorder %s4186_s4, %s2756_s27  ;;  %p2760_p1 = scmp.lt.u32.totalorder %s2756_s27, %s4186_s4 }
   0x7   :  { %p2762_p2 = pnand %p2760_p1, %p2757_p0 }
   0x9   :  { %2765 = shalt.err (!%p2762_p2)
}
   0xa   :  { %s2766_s8 = scalar_lea.vmem %s29_s22, 176  ;;  %s2770_s9 = scalar_lea.vmem %s29_s22, 192 }
   0xb   :  { %p2767_p3 = scmp.ne.s32.totalorder %s29_s22, %s2766_s8  ;;  %p2771_p4 = scmp.lt.s32.totalorder %s29_s22, %s29_s22 }
   0xc   :  { %p2772_p5 = scmp.lt.s32.totalorder %s2770_s9, %s2766_s8 }
   0xe   :  { %p2773_p6 = por %p2772_p5, %p2771_p4 }
  0x10   :  { %p2774_p7 = pnand %p2773_p6, %p2767_p3 }
  0x12   :  { %2777 = shalt.err (!%p2774_p7)
}
  0x13   :  { %31 = dma.hbm_to_vmem [thread:$0]  %s4186_s4, 176, %s29_s22, [#allocation3]  }
  0x14   :  { %s2778_s14 = scalar_lea.hbm %s4187_s5, 176 }
  0x15   :  { %p2779_p8 = scmp.ne.s32.totalorder %s4187_s5, %s2778_s14  ;;  %p2782_p9 = scmp.lt.u32.totalorder %s2778_s14, %s4187_s5 }
  0x17   :  { %p2784_p10 = pnand %p2782_p9, %p2779_p8 }
  0x19   :  { %2787 = shalt.err (!%p2784_p10)
}
  0x1a   :  { %s2788_s19 = scalar_lea.vmem %s39_s24, 176  ;;  %s2792_s20 = scalar_lea.vmem %s39_s24, 192 }
  0x1b   :  { %p2789_p11 = scmp.ne.s32.totalorder %s39_s24, %s2788_s19  ;;  %p2793_p12 = scmp.lt.s32.totalorder %s39_s24, %s39_s24 }
  0x1c   :  { %p2794_p13 = scmp.lt.s32.totalorder %s2792_s20, %s2788_s19 }
  0x1e   :  { %p2795_p0 = por %p2794_p13, %p2793_p12 }
  0x20   :  { %p2796_p1 = pnand %p2795_p0, %p2789_p11 }
  0x22   :  { %2799 = shalt.err (!%p2796_p1)
}
  0x23   :  { %41 = dma.hbm_to_vmem [thread:$0]  %s4187_s5, 176, %s39_s24, [#allocation6]  }
  0x24   :  { %2822 = dma.done.wait [#allocation3], 176  }
  0x25   :  { %2823 = vsyncadd [#allocation3], 4294967120 }
  0x26   :  { %2824 = dma.done.wait [#allocation6], 176  }
  0x27   :  { %2825 = vsyncadd [#allocation6], 4294967120  ;;  %v2605_v0 = vld [vmem:[%s4183_s1 + $0x40] sm:$0xff]   ;;  %v2609_v4 = vld [vmem:[%s4183_s1 + $0x48] sm:$0xff]   ;;  %s2830_s17 = smov 32   ;;  %vm2155_vm0 = vcmask 261120  }
  0x28   :  { %v2606_v1 = vld [vmem:[%s4183_s1 + $0xc0] sm:$0xff]   ;;  %2386 = vmatprep.subr.bf16.mxu0 %v2605_v0  ;;  %v2610_v5 = vld [vmem:[%s4183_s1 + $0xc8] sm:$0xff]   ;;  %v2613_v8 = vld [vmem:[%s4183_s1 + $0x50] sm:$0xff]   ;;  %vm2163_vm1 = vcmask 523264  }
  0x29   :  { %v2607_v2 = vld [vmem:[%s4183_s1] sm:$0xff]   ;;  %2426 = vmatprep.subr.bf16.mxu1 %v2606_v1  ;;  %v2611_v6 = vld [vmem:[%s4183_s1 + $0x8] sm:$0xff]   ;;  %v2614_v9 = vld [vmem:[%s4183_s1 + $0xd0] sm:$0xff]  }
  0x2a   :  { %v2608_v3 = vld [vmem:[%s4183_s1 + $0x80] sm:$0xff]   ;;  %2387 = vmatpush3.bf16.msra.mxu0 %v2607_v2  ;;  %v2612_v7 = vld [vmem:[%s4183_s1 + $0x88] sm:$0xff]   ;;  %v2615_v10 = vld [vmem:[%s4183_s1 + $0x10] sm:$0xff]  }
  0x2b   :  { %2427 = vmatpush3.bf16.msra.mxu1 %v2608_v3  ;;  %2388 = vmatprep.subr.bf16.mxu0 %v2609_v4  ;;  %v2616_v11 = vld [vmem:[%s4183_s1 + $0x90] sm:$0xff]   ;;  %v2617_v12 = vld [vmem:[%s4183_s1 + $0x58] sm:$0xff]   ;;  %v2621_v16 = vld [vmem:[%s4183_s1 + $0x60] sm:$0xff]  }
  0x2c   :  { %2428 = vmatprep.subr.bf16.mxu1 %v2610_v5  ;;  %v2618_v13 = vld [vmem:[%s4183_s1 + $0xd8] sm:$0xff]   ;;  %v2622_v17 = vld [vmem:[%s4183_s1 + $0xe0] sm:$0xff]   ;;  %v2625_v20 = vld [vmem:[%s4183_s1 + $0x68] sm:$0xff]  }
  0x2d   :  { %v2619_v14 = vld [vmem:[%s4183_s1 + $0x18] sm:$0xff]   ;;  %v2623_v18 = vld [vmem:[%s4183_s1 + $0x20] sm:$0xff]   ;;  %v2626_v21 = vld [vmem:[%s4183_s1 + $0xe8] sm:$0xff]  }
  0x2e   :  { %2389 = vmatpush3.bf16.msra.mxu0 %v2611_v6  ;;  %v2620_v15 = vld [vmem:[%s4183_s1 + $0x98] sm:$0xff]   ;;  %v2624_v19 = vld [vmem:[%s4183_s1 + $0xa0] sm:$0xff]   ;;  %v2627_v22 = vld [vmem:[%s4183_s1 + $0x28] sm:$0xff]  }
  0x2f   :  { %2429 = vmatpush3.bf16.msra.mxu1 %v2612_v7  ;;  %2390 = vmatprep.subr.bf16.mxu0 %v2613_v8  ;;  %v2628_v23 = vld [vmem:[%s4183_s1 + $0xa8] sm:$0xff]   ;;  %v2629_v24 = vld [vmem:[%s4183_s1 + $0x70] sm:$0xff]   ;;  %v2633_v28 = vld [vmem:[%s4183_s1 + $0x78] sm:$0xff]  }
  0x30   :  { %2430 = vmatprep.subr.bf16.mxu1 %v2614_v9  ;;  %v2630_v25 = vld [vmem:[%s4183_s1 + $0xf0] sm:$0xff]   ;;  %v2634_v29 = vld [vmem:[%s4183_s1 + $0xf8] sm:$0xff]   ;;  %v2637_v32 = vld [vmem:[%s4182_s0] ss:$36 sps:$4 sm:$0xff]  }
  0x31   :  { %v2631_v26 = vld [vmem:[%s4183_s1 + $0x30] sm:$0xff]   ;;  %v2635_v30 = vld [vmem:[%s4183_s1 + $0x38] sm:$0xff]   ;;  %v2639_v33 = vld [vmem:[%s4182_s0 + $0x4] ss:$36 sps:$4 sm:$0xff]  }
  0x32   :  { %2391 = vmatpush3.bf16.msra.mxu0 %v2615_v10  ;;  %v2632_v27 = vld [vmem:[%s4183_s1 + $0xb0] sm:$0xff]   ;;  %v2636_v31 = vld [vmem:[%s4183_s1 + $0xb8] sm:$0xff]   ;;  %v2640_v34 = vld [vmem:[%s4182_s0 + $0x8] ss:$36 sps:$4 sm:$0xff]   ;;  %862 = vmatprep.mubr.bf16.mxu0 %v2639_v33 }
  0x33   :  { %2431 = vmatpush3.bf16.msra.mxu1 %v2616_v11  ;;  %2392 = vmatprep.subr.bf16.mxu0 %v2617_v12  ;;  %v2642_v35 = vld [vmem:[%s4182_s0 + $0xc] ss:$36 sps:$4 sm:$0xff]   ;;  %v2643_v36 = vld [vmem:[%s4183_s1 + $0x140] sm:$0xff]   ;;  %v2653_v45 = vld [vmem:[%s4182_s0 + $0x54] ss:$36 sps:$4 sm:$0xff]  }
  0x34   :  { %2432 = vmatprep.subr.bf16.mxu1 %v2618_v13  ;;  %926 = vmatprep.mubr.bf16.mxu1 %v2642_v35  ;;  %v2644_v37 = vld [vmem:[%s4183_s1 + $0x1c0] sm:$0xff]   ;;  %v2647_v40 = vld [vmem:[%s4183_s1 + $0x148] sm:$0xff]   ;;  %v2656_v47 = vld [vmem:[%s4182_s0 + $0x50] ss:$36 sps:$4 sm:$0xff]  }
  0x35   :  { %v2645_v38 = vld [vmem:[%s4183_s1 + $0x100] sm:$0xff]   ;;  %v2648_v41 = vld [vmem:[%s4183_s1 + $0x1c8] sm:$0xff]   ;;  %v2657_v48 = vld [vmem:[%s4183_s1 + $0x150] sm:$0xff]  }
  0x36   :  { %2393 = vmatpush3.bf16.msra.mxu0 %v2619_v14  ;;  %v2646_v39 = vld [vmem:[%s4183_s1 + $0x180] sm:$0xff]   ;;  %v2649_v42 = vld [vmem:[%s4183_s1 + $0x108] sm:$0xff]   ;;  %v2658_v49 = vld [vmem:[%s4183_s1 + $0x1d0] sm:$0xff]  }
  0x37   :  { %2433 = vmatpush3.bf16.msra.mxu1 %v2620_v15  ;;  %2394 = vmatprep.subr.bf16.mxu0 %v2621_v16  ;;  %v2650_v43 = vld [vmem:[%s4183_s1 + $0x188] sm:$0xff]   ;;  %v2659_v50 = vld [vmem:[%s4183_s1 + $0x110] sm:$0xff]   ;;  %v2661_v52 = vld [vmem:[%s4183_s1 + $0x158] sm:$0xff]  }
  0x38   :  { %2434 = vmatprep.subr.bf16.mxu1 %v2622_v17  ;;  %v2651_v44 = vld [vmem:[%s4182_s0 + $0x4c] ss:$36 sps:$4 sm:$0xff]   ;;  %v2662_v53 = vld [vmem:[%s4183_s1 + $0x1d8] sm:$0xff]   ;;  %v2671_v60 = vld [vmem:[%s4183_s1 + $0x160] sm:$0xff]  }
  0x39   :  { %v2655_v46 = vld [vmem:[%s4182_s0 + $0x48] ss:$36 sps:$4 sm:$0xff]   ;;  %v2660_v51 = vld [vmem:[%s4183_s1 + $0x190] sm:$0xff]   ;;  %v2663_v54 = vld [vmem:[%s4183_s1 + $0x118] sm:$0xff]  }
  0x3a   :  { %2395 = vmatpush3.bf16.msra.mxu0 %v2623_v18  ;;  %v2664_v55 = vld [vmem:[%s4183_s1 + $0x198] sm:$0xff]   ;;  %v2669_v58 = vld [vmem:[%s4182_s0 + $0x90] ss:$36 sps:$4 sm:$0xff]   ;;  %v2672_v61 = vld [vmem:[%s4183_s1 + $0x1e0] sm:$0xff]  }
  0x3b   :  { %2435 = vmatpush3.bf16.msra.mxu1 %v2624_v19  ;;  %2396 = vmatprep.subr.bf16.mxu0 %v2625_v20  ;;  %v2665_v56 = vld [vmem:[%s4182_s0 + $0x94] ss:$36 sps:$4 sm:$0xff]   ;;  %v2667_v57 = vld [vmem:[%s4182_s0 + $0x9c] ss:$36 sps:$4 sm:$0xff]   ;;  %v2675_v0 = vld [vmem:[%s4183_s1 + $0x168] sm:$0xff]  }
  0x3c   :  { %2436 = vmatprep.subr.bf16.mxu1 %v2626_v21  ;;  %v2670_v59 = vld [vmem:[%s4182_s0 + $0x98] ss:$36 sps:$4 sm:$0xff]   ;;  %v2673_v62 = vld [vmem:[%s4183_s1 + $0x120] sm:$0xff]   ;;  %v2676_v1 = vld [vmem:[%s4183_s1 + $0x1e8] sm:$0xff]  }
  0x3d   :  { %v2674_v63 = vld [vmem:[%s4183_s1 + $0x1a0] sm:$0xff]   ;;  %v2677_v2 = vld [vmem:[%s4183_s1 + $0x128] sm:$0xff]   ;;  %v79_v4 = vld [vmem:[%s4182_s0 + $0xd8] sm:$0xff] }
  0x3e   :  { %2397 = vmatpush3.bf16.msra.mxu0 %v2627_v22  ;;  %v2678_v3 = vld [vmem:[%s4183_s1 + $0x1a8] sm:$0xff]   ;;  %v80_v5 = vld [vmem:[%s4182_s0 + $0xe0] sm:$0xff]  ;;  %v2306_v6 = vcombine.high %v79_v4, %v79_v4  ;;  %v2305_v8 = vcombine.low %v79_v4, %v79_v4  ;;  %v2683_v10 = vld [vmem:[%s4183_s1 + $0x170] sm:$0xff]  }
  0x3f   :  { %2437 = vmatpush3.bf16.msra.mxu1 %v2628_v23  ;;  %2398 = vmatprep.subr.bf16.mxu0 %v2629_v24  ;;  %v2308_v7 = vcombine.high %v80_v5, %v80_v5  ;;  %v2307_v9 = vcombine.low %v80_v5, %v80_v5  ;;  %v2684_v11 = vld [vmem:[%s4183_s1 + $0x1f0] sm:$0xff]   ;;  %v2687_v14 = vld [vmem:[%s4183_s1 + $0x178] sm:$0xff]   ;;  %v2697_v22 = vld [vmem:[%s4183_s1 + $0x200] sm:$0xff]  }
  0x40   :  { %2438 = vmatprep.subr.bf16.mxu1 %v2630_v25  ;;  %v2685_v12 = vld [vmem:[%s4183_s1 + $0x130] sm:$0xff]   ;;  %v2688_v15 = vld [vmem:[%s4183_s1 + $0x1f8] sm:$0xff]   ;;  %v2698_v23 = vld [vmem:[%s4183_s1 + $0x208] sm:$0xff]  }
  0x41   :  { %v2686_v13 = vld [vmem:[%s4183_s1 + $0x1b0] sm:$0xff]   ;;  %v2689_v16 = vld [vmem:[%s4183_s1 + $0x138] sm:$0xff]   ;;  %v2701_v25 = vld [vmem:[%s4182_s0 + $0x64] ss:$36 sps:$4 sm:$0xff]  }
  0x42   :  { %2399 = vmatpush3.bf16.msra.mxu0 %v2631_v26  ;;  %v2690_v17 = vld [vmem:[%s4183_s1 + $0x1b8] sm:$0xff]   ;;  %v2691_v18 = vld [vmem:[%s4182_s0 + $0x10] ss:$36 sps:$4 sm:$0xff]   ;;  %v81_v33 = vld [vmem:[%s4182_s0 + $0xe8] sm:$0xff] }
  0x43   :  { %2439 = vmatpush3.bf16.msra.mxu1 %v2632_v27  ;;  %2400 = vmatprep.subr.bf16.mxu0 %v2633_v28  ;;  %v2693_v19 = vld [vmem:[%s4182_s0 + $0x14] ss:$36 sps:$4 sm:$0xff]   ;;  %v2696_v21 = vld [vmem:[%s4182_s0 + $0x1c] ss:$36 sps:$4 sm:$0xff]  }
  0x44   :  { %2440 = vmatprep.subr.bf16.mxu1 %v2634_v29  ;;  %v2694_v20 = vld [vmem:[%s4182_s0 + $0x18] ss:$36 sps:$4 sm:$0xff]   ;;  %v2705_v27 = vld [vmem:[%s4183_s1 + $0x210] sm:$0xff]   ;;  %v2704_v28 = vld [vmem:[%s4182_s0 + $0x60] ss:$36 sps:$4 sm:$0xff]  }
  0x45   :  { %v2699_v24 = vld [vmem:[%s4182_s0 + $0x5c] ss:$36 sps:$4 sm:$0xff]   ;;  %v2707_v29 = vld [vmem:[%s4182_s0 + $0xa4] ss:$36 sps:$4 sm:$0xff]  }
  0x46   :  { %2401 = vmatpush3.bf16.msra.mxu0 %v2635_v30  ;;  %v2703_v26 = vld [vmem:[%s4182_s0 + $0x58] ss:$36 sps:$4 sm:$0xff]   ;;  %v2709_v30 = vld [vmem:[%s4182_s0 + $0xac] ss:$36 sps:$4 sm:$0xff]   ;;  %v2711_v35 = vld [vmem:[%s4182_s0 + $0xa0] ss:$36 sps:$4 sm:$0xff]  }
  0x47   :  { %2441 = vmatpush3.bf16.msra.mxu1 %v2636_v31  ;;  %2466 = vmatprep.subr.bf16.mxu0 %v2643_v36  ;;  %v2706_v31 = vld [vmem:[%s4183_s1 + $0x218] sm:$0xff]   ;;  %v2712_v36 = vld [vmem:[%s4182_s0 + $0xa8] ss:$36 sps:$4 sm:$0xff]   ;;  %v3284_v4 = vld [vmem:[%s4184_s2 + $0x60] sm:$0xff] }
  0x48   :  { %2506 = vmatprep.subr.bf16.mxu1 %v2644_v37  ;;  %v2310_v37 = vcombine.high %v81_v33, %v81_v33 }
  0x49   :  { %863 = vmatmul.mubr.bf16.vlgmr.msra.gmra.mrb[0].mxu0 %v2637_v32  ;;  %v2713_v32 = vld [vmem:[%s4183_s1 + $0x220] sm:$0xff]  }
  0x4a   :  { %927 = vmatmul.mubr.bf16.vlgmr.msra.gmra.mrb[0].mxu1 %v2640_v34  ;;  %2467 = vmatpush3.bf16.msra.mxu0 %v2645_v38  ;;  %v82_v34 = vld [vmem:[%s4182_s0 + $0xf0] sm:$0xff] }
  0x4b   :  { %2507 = vmatpush3.bf16.msra.mxu1 %v2646_v39  ;;  %2468 = vmatprep.subr.bf16.mxu0 %v2647_v40  ;;  %v2312_v38 = vcombine.high %v82_v34, %v82_v34  ;;  %v2714_v39 = vld [vmem:[%s4183_s1 + $0x228] sm:$0xff]   ;;  %v2120_v40 = vld [vmem:[%s4185_s3] sm:$0xff] }
  0x4c   :  { %2508 = vmatprep.subr.bf16.mxu1 %v2648_v41  ;;  %870 = vmatprep.mubr.bf16.mxu0 %v2651_v44  ;;  %v2122_v41 = vld [vmem:[%s4185_s3 + $0x10] sm:$0xff]  ;;  %v2311_v44 = vcombine.low %v82_v34, %v82_v34  ;;  %v3364_v34 = vld [vmem:[%s4184_s2 + $0x198] sm:$0xff] }
  0x4d   :  { %934 = vmatprep.mubr.bf16.mxu1 %v2653_v45  ;;  %2134 = vrot.lane.b32.xlu0 %v2120_v40, %s2830_s17  ;;  %v2721_v45 = vld [vmem:[%s4182_s0 + $0x20] ss:$36 sps:$4 sm:$0xff]  }
  0x4e   :  { %2469 = vmatpush3.bf16.msra.mxu0 %v2649_v42  ;;  %v2719_v42 = vld [vmem:[%s4183_s1 + $0x230] sm:$0xff]   ;;  %2138 = vrot.lane.b32.xlu1 %v2122_v41, %s2830_s17  ;;  %v1199_v41 = vmul.f32 %v3364_v34, %v3364_v34 }
  0x4f   :  { %2509 = vmatpush3.bf16.msra.mxu1 %v2650_v43  ;;  %2470 = vmatprep.subr.bf16.mxu0 %v2657_v48  ;;  %v2309_v43 = vcombine.low %v81_v33, %v81_v33  ;;  %v2121_v48 = vld [vmem:[%s4185_s3 + $0x8] sm:$0xff]  ;;  %v3359_v33 = vld [vmem:[%s4184_s2 + $0x190] sm:$0xff] }
  0x50   :  { %2510 = vmatprep.subr.bf16.mxu1 %v2658_v49  ;;  %v2123_v49 = vld [vmem:[%s4185_s3 + $0x18] sm:$0xff]  ;;  %v1198_v40 = vmul.f32 %v3359_v33, %v3359_v33 }
  0x51   :  { %871 = vmatmul.mubr.bf16.gmra.mrb[4].mxu0 %v2655_v46  ;;  %v2722_v46 = vld [vmem:[%s4182_s0 + $0xb0] ss:$36 sps:$4 sm:$0xff]   ;;  %2136 = vrot.lane.b32.xlu0 %v2121_v48, %s2830_s17 }
  0x52   :  { %935 = vmatmul.mubr.bf16.gmra.mrb[4].mxu1 %v2656_v47  ;;  %2471 = vmatpush3.bf16.msra.mxu0 %v2659_v50  ;;  %v2720_v47 = vld [vmem:[%s4183_s1 + $0x238] sm:$0xff]   ;;  %v2723_v50 = vld [vmem:[%s4182_s0 + $0x68] ss:$36 sps:$4 sm:$0xff]  }
  0x53   :  { %2511 = vmatpush3.bf16.msra.mxu1 %v2660_v51  ;;  %2472 = vmatprep.subr.bf16.mxu0 %v2661_v52  ;;  %v2124_v51 = vld [vmem:[%s4185_s3 + $0x20] sm:$0xff]  ;;  %v2724_v52 = vld [vmem:[%s4182_s0 + $0xf8] ss:$0 sps:$4 sm:$0xff]  }
  0x54   :  { %2512 = vmatprep.subr.bf16.mxu1 %v2662_v53  ;;  %878 = vmatprep.mubr.bf16.mxu0 %v2665_v56  ;;  %v2125_v53 = vld [vmem:[%s4185_s3 + $0x28] sm:$0xff] }
  0x55   :  { %942 = vmatprep.mubr.bf16.mxu1 %v2667_v57  ;;  %2140 = vrot.lane.b32.xlu1 %v2123_v49, %s2830_s17  ;;  %v3242_v56 = vld [vmem:[%s4184_s2 + $0x8] sm:$0xff]  ;;  %v3247_v57 = vld [vmem:[%s4184_s2 + $0x50] sm:$0xff] }
  0x56   :  { %2473 = vmatpush3.bf16.msra.mxu0 %v2663_v54  ;;  %2142 = vrot.lane.b32.xlu0 %v2124_v51, %s2830_s17  ;;  %v2126_v54 = vld [vmem:[%s4185_s3 + $0x30] sm:$0xff] }
  0x57   :  { %2513 = vmatpush3.bf16.msra.mxu1 %v2664_v55  ;;  %2474 = vmatprep.subr.bf16.mxu0 %v2671_v60  ;;  %v3237_v55 = vld [vmem:[%s4184_s2] sm:$0xff] }
  0x58   :  { %2514 = vmatprep.subr.bf16.mxu1 %v2672_v61  ;;  %v1188_v60 = vmul.f32 %v3237_v55, %v3237_v55  ;;  %v1189_v61 = vmul.f32 %v3242_v56, %v3242_v56 }
  0x59   :  { %879 = vmatmul.mubr.bf16.gmra.mrb[8].mxu0 %v2669_v58  ;;  %2144 = vrot.lane.b32.xlu1 %v2125_v53, %s2830_s17  ;;  %v3252_v58 = vld [vmem:[%s4184_s2 + $0x58] sm:$0xff] }
  0x5a   :  { %943 = vmatmul.mubr.bf16.gmra.mrb[8].mxu1 %v2670_v59  ;;  %2475 = vmatpush3.bf16.msra.mxu0 %v2673_v62  ;;  %v1164_v59 = vadd.f32 %v3247_v57, %v3237_v55  ;;  %v1190_v62 = vmul.f32 %v3247_v57, %v3247_v57 }
  0x5b   :  { %2515 = vmatpush3.bf16.msra.mxu1 %v2674_v63  ;;  %2476 = vmatprep.subr.bf16.mxu0 %v2675_v0  ;;  %v3265_v63 = vld [vmem:[%s4184_s2 + $0x10] sm:$0xff]  ;;  %v3270_v0 = vld [vmem:[%s4184_s2 + $0xa0] sm:$0xff] }
  0x5c   :  { %2516 = vmatprep.subr.bf16.mxu1 %v2676_v1  ;;  %886 = vmatprep.mubr.bf16.mxu0 %v2306_v6  ;;  %v3275_v1 = vld [vmem:[%s4184_s2 + $0xa8] sm:$0xff]  ;;  %v1165_v5 = vadd.f32 %v1164_v59, %v3270_v0  ;;  %v1192_v6 = vmul.f32 %v3270_v0, %v3270_v0  ;;  %v3406_v59 = vld [vmem:[%s4184_s2 + $0x158] sm:$0xff] }
  0x5d   :  { %950 = vmatprep.mubr.bf16.mxu1 %v2308_v7  ;;  %2146 = vrot.lane.b32.xlu0 %v2126_v54, %s2830_s17  ;;  %v1193_v7 = vmul.f32 %v3275_v1, %v3275_v1  ;;  %4237 = vst [vmem:[#allocation17_spill] sm:$0xff] %v3406_v59 }
  0x5e   :  { %2477 = vmatpush3.bf16.msra.mxu0 %v2677_v2  ;;  %v1176_v2 = vadd.f32 %v3252_v58, %v3242_v56 }
  0x5f   :  { %2517 = vmatpush3.bf16.msra.mxu1 %v2678_v3  ;;  %2478 = vmatprep.subr.bf16.mxu0 %v2683_v10  ;;  %v1191_v3 = vmul.f32 %v3252_v58, %v3252_v58  ;;  %v3299_v10 = vld [vmem:[%s4184_s2 + $0xf0] sm:$0xff] }
  0x60   :  { %2518 = vmatprep.subr.bf16.mxu1 %v2684_v11  ;;  %v3304_v11 = vld [vmem:[%s4184_s2 + $0xf8] sm:$0xff] }
  0x61   :  { %887 = vmatmul.mubr.bf16.gmra.mrb[12].mxu0 %v2305_v8  ;;  %v1202_v8 = vadd.f32 %v1190_v62, %v1188_v60  ;;  %v3411_v60 = vld [vmem:[%s4184_s2 + $0x1f0] sm:$0xff] }
  0x62   :  { %951 = vmatmul.mubr.bf16.gmra.mrb[12].mxu1 %v2307_v9  ;;  %2479 = vmatpush3.bf16.msra.mxu0 %v2685_v12  ;;  %v3294_v9 = vld [vmem:[%s4184_s2 + $0xb0] sm:$0xff]  ;;  %v1177_v12 = vadd.f32 %v1176_v2, %v3275_v1  ;;  %4238 = vst [vmem:[#allocation18_spill] sm:$0xff] %v3411_v60 }
  0x63   :  { %2519 = vmatpush3.bf16.msra.mxu1 %v2686_v13  ;;  %2480 = vmatprep.subr.bf16.mxu0 %v2687_v14  ;;  %4231 = vst [vmem:[#allocation11_spill] sm:$0xff] %v3294_v9  ;;  %v1214_v13 = vadd.f32 %v1191_v3, %v1189_v61  ;;  %v1358_v14 = vadd.f32 %v3284_v4, %v3265_v63 }
  0x64   :  { %2520 = vmatprep.subr.bf16.mxu1 %v2688_v15  ;;  %990 = vmatprep.mubr.bf16.mxu0 %v2693_v19  ;;  %v1166_v15 = vadd.f32 %v1165_v5, %v3299_v10  ;;  %v3317_v19 = vld [vmem:[%s4184_s2 + $0x18] sm:$0xff] }
  0x65   :  { %1054 = vmatprep.mubr.bf16.mxu1 %v2696_v21  ;;  %v3327_v21 = vld [vmem:[%s4184_s2 + $0x100] sm:$0xff] }
  0x66   :  { %2481 = vmatpush3.bf16.msra.mxu0 %v2689_v16  ;;  %v1194_v16 = vmul.f32 %v3299_v10, %v3299_v10  ;;  %4232 = vst [vmem:[#allocation12_spill] sm:$0xff] %v3327_v21 }
  0x67   :  { %2521 = vmatpush3.bf16.msra.mxu1 %v2690_v17  ;;  %2558 = vmatprep.subr.bf16.mxu0 %v2697_v22  ;;  %v1195_v17 = vmul.f32 %v3304_v11, %v3304_v11 }
  0x68   :  { %2582 = vmatprep.subr.bf16.mxu1 %v2697_v22 }
  0x69   :  { %991 = vmatmul.mubr.bf16.vlgmr.msra.gmra.mrb[16].mxu0 %v2691_v18  ;;  %v1203_v18 = vadd.f32 %v1202_v8, %v1192_v6  ;;  %v3423_v8 = vmul.f32 %v3265_v63, %v3265_v63 }
  0x6a   :  { %1055 = vmatmul.mubr.bf16.vlgmr.msra.gmra.mrb[16].mxu1 %v2694_v20  ;;  %2559 = vmatpush3.bf16.msra.mxu0 %v2697_v22  ;;  %v3322_v20 = vld [vmem:[%s4184_s2 + $0x68] sm:$0xff] }
  0x6b   :  { %2590 = vmatpush3.bf16.msra.mxu1 %v2697_v22  ;;  %2560 = vmatprep.subr.bf16.mxu0 %v2698_v23  ;;  %v3332_v22 = vld [vmem:[%s4184_s2 + $0x140] sm:$0xff] }
  0x6c   :  { %2583 = vmatprep.subr.bf16.mxu1 %v2698_v23  ;;  %998 = vmatprep.mubr.bf16.mxu0 %v2699_v24  ;;  %v1178_v24 = vadd.f32 %v1177_v12, %v3304_v11  ;;  %v3427_v12 = vmul.f32 %v3317_v19, %v3317_v19 }
  0x6d   :  { %1062 = vmatprep.mubr.bf16.mxu1 %v2701_v25  ;;  %v1215_v25 = vadd.f32 %v1214_v13, %v1193_v7  ;;  %v3419_v7 = vld [vmem:[%s4184_s2 + $0x1a8] sm:$0xff] }
  0x6e   :  { %2561 = vmatpush3.bf16.msra.mxu0 %v2698_v23  ;;  %4239 = vst [vmem:[#allocation19_spill] sm:$0xff] %v3419_v7 }
  0x6f   :  { %2591 = vmatpush3.bf16.msra.mxu1 %v2698_v23  ;;  %2562 = vmatprep.subr.bf16.mxu0 %v2705_v27  ;;  %v3337_v23 = vld [vmem:[%s4184_s2 + $0x148] sm:$0xff] }
  0x70   :  { %2584 = vmatprep.subr.bf16.mxu1 %v2705_v27 }
  0x71   :  { %999 = vmatmul.mubr.bf16.gmra.mrb[20].mxu0 %v2703_v26  ;;  %v1359_v26 = vadd.f32 %v1358_v14, %v3294_v9 }
  0x72   :  { %1063 = vmatmul.mubr.bf16.gmra.mrb[20].mxu1 %v2704_v28  ;;  %1006 = vmatprep.mubr.bf16.mxu0 %v2707_v29  ;;  %v1196_v28 = vmul.f32 %v3332_v22, %v3332_v22  ;;  %v1197_v29 = vmul.f32 %v3337_v23, %v3337_v23 }
  0x73   :  { %2563 = vmatpush3.bf16.msra.mxu0 %v2705_v27  ;;  %1070 = vmatprep.mubr.bf16.mxu1 %v2709_v30  ;;  %v1204_v30 = vadd.f32 %v1203_v18, %v1194_v16 }
  0x74   :  { %2592 = vmatpush3.bf16.msra.mxu1 %v2705_v27  ;;  %2564 = vmatprep.subr.bf16.mxu0 %v2706_v31  ;;  %v1167_v27 = vadd.f32 %v1166_v15, %v3332_v22 }
  0x75   :  { %2585 = vmatprep.subr.bf16.mxu1 %v2706_v31 }
  0x77   :  { %2565 = vmatpush3.bf16.msra.mxu0 %v2706_v31 }
  0x78   :  { %2593 = vmatpush3.bf16.msra.mxu1 %v2706_v31  ;;  %2566 = vmatprep.subr.bf16.mxu0 %v2713_v32  ;;  %v3349_v31 = vld [vmem:[%s4184_s2 + $0xb8] sm:$0xff] }
  0x79   :  { %1007 = vmatmul.mubr.bf16.gmra.mrb[24].mxu0 %v2711_v35  ;;  %2586 = vmatprep.subr.bf16.mxu1 %v2713_v32  ;;  %4233 = vst [vmem:[#allocation13_spill] sm:$0xff] %v3349_v31  ;;  %v1179_v35 = vadd.f32 %v1178_v24, %v3337_v23  ;;  %v1384_v24 = vmul.f32 %v3284_v4, %v3284_v4 }
  0x7a   :  { %1071 = vmatmul.mubr.bf16.gmra.mrb[24].mxu1 %v2712_v36  ;;  %1014 = vmatprep.mubr.bf16.mxu0 %v2310_v37  ;;  %v1216_v36 = vadd.f32 %v1215_v25, %v1195_v17  ;;  %v1360_v37 = vadd.f32 %v1359_v26, %v3327_v21  ;;  %v1385_v25 = vmul.f32 %v3322_v20, %v3322_v20 }
  0x7b   :  { %2567 = vmatpush3.bf16.msra.mxu0 %v2713_v32  ;;  %1078 = vmatprep.mubr.bf16.mxu1 %v2312_v38  ;;  %v1370_v38 = vadd.f32 %v3322_v20, %v3317_v19 }
  0x7c   :  { %2594 = vmatpush3.bf16.msra.mxu1 %v2713_v32  ;;  %2568 = vmatprep.subr.bf16.mxu0 %v2714_v39  ;;  %v3354_v32 = vld [vmem:[%s4184_s2 + $0x150] sm:$0xff]  ;;  %v1217_v48 = vadd.f32 %v1216_v36, %v1197_v29  ;;  %v3439_v36 = vld [vmem:[%s4184_s2 + $0x1f8] sm:$0xff] }
  0x7d   :  { %2587 = vmatprep.subr.bf16.mxu1 %v2714_v39  ;;  %4234 = vst [vmem:[#allocation14_spill] sm:$0xff] %v3354_v32  ;;  %v1361_v49 = vadd.f32 %v1360_v37, %v3354_v32  ;;  %4240 = vst [vmem:[#allocation20_spill] sm:$0xff] %v3439_v36  ;;  %v1386_v37 = vmul.f32 %v3294_v9, %v3294_v9 }
  0x7e   :  { %v1218_v62 = vadd.f32 %v1217_v48, %v1199_v41 }
  0x7f   :  { %2569 = vmatpush3.bf16.msra.mxu0 %v2714_v39 }
  0x80   :  { %2595 = vmatpush3.bf16.msra.mxu1 %v2714_v39  ;;  %2570 = vmatprep.subr.bf16.mxu0 %v2719_v42  ;;  %v1168_v39 = vadd.f32 %v1167_v27, %v3359_v33 }
  0x81   :  { %1015 = vmatmul.mubr.bf16.gmra.mrb[28].mxu0 %v2309_v43  ;;  %2588 = vmatprep.subr.bf16.mxu1 %v2719_v42  ;;  %v3378_v43 = vld [vmem:[%s4184_s2 + $0x108] sm:$0xff] }
  0x82   :  { %1079 = vmatmul.mubr.bf16.gmra.mrb[28].mxu1 %v2311_v44  ;;  %2574 = vmatprep.mubr.bf16.mxu0 %v2721_v45  ;;  %4235 = vst [vmem:[#allocation15_spill] sm:$0xff] %v3378_v43  ;;  %v3383_v44 = vld [vmem:[%s4184_s2 + $0x1a0] sm:$0xff] }
  0x83   :  { %2571 = vmatpush3.bf16.msra.mxu0 %v2719_v42  ;;  %2578 = vmatprep.mubr.bf16.mxu1 %v2722_v46  ;;  %4236 = vst [vmem:[#allocation16_spill] sm:$0xff] %v3383_v44  ;;  %v3388_v45 = vld [vmem:[%s4184_s2 + $0x1e0] sm:$0xff]  ;;  %v3393_v46 = vld [vmem:[%s4184_s2 + $0x1e8] sm:$0xff]  ;;  %v1362_v2 = vadd.f32 %v1361_v49, %v3383_v44 }
  0x84   :  { %2596 = vmatpush3.bf16.msra.mxu1 %v2719_v42  ;;  %2572 = vmatprep.subr.bf16.mxu0 %v2720_v47  ;;  %v1205_v42 = vadd.f32 %v1204_v30, %v1196_v28  ;;  %v1169_v51 = vadd.f32 %v1168_v39, %v3388_v45  ;;  %v1201_v53 = vmul.f32 %v3393_v46, %v3393_v46  ;;  %v1245_v39 = vlaneseq }
  0x85   :  { %2589 = vmatprep.subr.bf16.mxu1 %v2720_v47  ;;  %v1363_v15 = vadd.f32 %v1362_v2, %v3411_v60 }
  0x86   :  { %v1206_v54 = vadd.f32 %v1205_v42, %v1198_v40  ;;  %v1170_v5 = vrot.slane %v1169_v51, 4  ;;  %v1219_v14 = vadd.f32 %v1218_v62, %v1201_v53  ;;  %v2831_v42 = vmov 1966171168  }
  0x87   :  { %2573 = vmatpush3.bf16.msra.mxu0 %v2720_v47  ;;  %v1364_v28 = vrot.slane %v1363_v15, 4 }
  0x88   :  { %2597 = vmatpush3.bf16.msra.mxu1 %v2720_v47  ;;  %v1180_v47 = vadd.f32 %v1179_v35, %v3364_v34  ;;  %v1171_v17 = vadd.f32 %v1170_v5, %v1169_v51  ;;  %v1220_v27 = vrot.slane %v1219_v14, 4  ;;  %v1246_v51 = vshrl.u32 %v1245_v39, 7 }
  0x89   :  { %v1365_v41 = vadd.f32 %v1364_v28, %v1363_v15 }
  0x8a   :  { %2575 = vmatmul.mubr.bf16.vlgmr.msra.gmra.mrb[32].mxu0 %v2723_v50  ;;  %v1371_v50 = vadd.f32 %v1370_v38, %v3349_v31  ;;  %v1181_v61 = vadd.f32 %v1180_v47, %v3393_v46  ;;  %v1172_v30 = vrot.slane %v1171_v17, 2  ;;  %v1387_v38 = vmul.f32 %v3349_v31, %v3349_v31 }
  0x8b   :  { %2579 = vmatmul.mubr.bf16.vlgmr.msra.gmra.mrb[32].mxu1 %v2724_v52  ;;  %v1200_v52 = vmul.f32 %v3388_v45, %v3388_v45  ;;  %v1221_v40 = vadd.f32 %v1220_v27, %v1219_v14  ;;  %v1243_v47 = vunpack.c.l.s4 %v2831_v42  ;;  %v1366_v53 = vrot.slane %v1365_v41, 2 }
  0x8c   :  { %v1372_v3 = vadd.f32 %v1371_v50, %v3378_v43  ;;  %v1182_v13 = vrot.slane %v1181_v61, 4  ;;  %v1173_v48 = vadd.f32 %v1172_v30, %v1171_v17  ;;  %v1389_v14 = vmul.f32 %v3378_v43, %v3378_v43 }
  0x8d   :  { %v1207_v6 = vadd.f32 %v1206_v54, %v1200_v52  ;;  %v1222_v52 = vrot.slane %v1221_v40, 2  ;;  %v3450_v15 = vsub.s32 0, %v1246_v51  ;;  %v3452_v27 = vsub.s32 1, %v1246_v51 }
  0x8e   :  { %v1373_v16 = vadd.f32 %v1372_v3, %v3406_v59  ;;  %v1183_v26 = vadd.f32 %v1182_v13, %v1181_v61  ;;  %v1244_v61 = vunpack.c.0.s8 %v1243_v47  ;;  %v1174_v62 = vrot.slane %v1173_v48, 1 }
  0x8f   :  { %v1208_v18 = vrot.slane %v1207_v6, 4  ;;  %v1223_v5 = vadd.f32 %v1222_v52, %v1221_v40  ;;  %v1388_v13 = vmul.f32 %v3327_v21, %v3327_v21 }
  0x90   :  { %v1374_v29 = vadd.f32 %v1373_v16, %v3419_v7  ;;  %v1184_v49 = vrot.slane %v1183_v26, 2  ;;  %v1175_v16 = vadd.f32 %v1174_v62, %v1173_v48  ;;  %v3463_v48 = vld [vmem:[%s4184_s2 + $0x20] sm:$0xff]  ;;  %v3484_v62 = vld [vmem:[%s4184_s2 + $0x78] sm:$0xff] }
  0x91   :  { %v1209_v35 = vadd.f32 %v1208_v18, %v1207_v6  ;;  %v1367_v6 = vadd.f32 %v1366_v53, %v1365_v41  ;;  %v1224_v28 = vrot.slane %v1223_v5, 1  ;;  %4242 = vst [vmem:[#allocation22_spill] sm:$0xff] %v3463_v48  ;;  %4245 = vst [vmem:[#allocation25_spill] sm:$0xff] %v3484_v62 }
  0x92   :  { %v1375_v54 = vadd.f32 %v1374_v29, %v3439_v36  ;;  %v1185_v2 = vadd.f32 %v1184_v49, %v1183_v26  ;;  %v3454_v26 = vsub.s32 %v1244_v61, %v1246_v51  ;;  %v3456_v40 = vmul.f32 0.020408163, %v1175_v16  ;;  %v3479_v61 = vld [vmem:[%s4184_s2 + $0x70] sm:$0xff] }
  0x93   :  { %v1210_v50 = vrot.slane %v1209_v35, 2  ;;  %v1368_v29 = vrot.slane %v1367_v6, 1  ;;  %v1225_v41 = vadd.f32 %v1224_v28, %v1223_v5  ;;  %v1390_v49 = vmul.f32 %v3354_v32, %v3354_v32  ;;  %4244 = vst [vmem:[#allocation24_spill] sm:$0xff] %v3479_v61 }
  0x94   :  { %v1186_v17 = vrot.slane %v1185_v2, 1  ;;  %v1376_v30 = vrot.slane %v1375_v54, 4  ;;  %4241 = vst [vmem:[#allocation21_spill] sm:$0xff] %v3454_v26  ;;  %v1230_v53 = vmul.f32 %v3456_v40, %v3456_v40  ;;  %v1392_v5 = vmul.f32 %v3383_v44, %v3383_v44  ;;  %v3609_v44 = vld [vmem:[%s4184_s2 + $0xd0] sm:$0xff] }
  0x95   :  { %v1211_v3 = vadd.f32 %v1210_v50, %v1209_v35  ;;  %v1369_v42 = vadd.f32 %v1368_v29, %v1367_v6  ;;  %v3468_v50 = vld [vmem:[%s4184_s2 + $0x28] sm:$0xff]  ;;  %v1393_v6 = vmul.f32 %v3419_v7, %v3419_v7  ;;  %v1408_v28 = vadd.f32 %v1385_v25, %v3427_v12  ;;  %v3497_v29 = vld [vmem:[%s4184_s2 + $0xc0] sm:$0xff] }
  0x96   :  { %v1187_v35 = vadd.f32 %v1186_v17, %v1185_v2  ;;  %v1377_v47 = vadd.f32 %v1376_v30, %v1375_v54  ;;  %4243 = vst [vmem:[#allocation23_spill] sm:$0xff] %v3468_v50  ;;  %v1391_v54 = vmul.f32 %v3406_v59, %v3406_v59  ;;  %v1229_v2 = vmul.f32 0.020408163, %v1225_v41  ;;  %4246 = vst [vmem:[#allocation26_spill] sm:$0xff] %v3497_v29  ;;  %v3502_v30 = vld [vmem:[%s4184_s2 + $0xc8] sm:$0xff] }
  0x97   :  { %v1212_v18 = vrot.slane %v1211_v3, 1  ;;  %4247 = vst [vmem:[#allocation27_spill] sm:$0xff] %v3502_v30  ;;  %v1552_v41 = vadd.f32 %v3479_v61, %v3463_v48 }
  0x98   :  { %v3470_v51 = vmul.f32 0.020408163, %v1187_v35 }
  0x99   :  { %v1213_v39 = vadd.f32 %v1212_v18, %v1211_v3  ;;  %v1378_v3 = vrot.slane %v1377_v47, 2  ;;  %v1396_v18 = vadd.f32 %v1384_v24, %v3423_v8  ;;  %v1564_v8 = vadd.f32 %v3484_v62, %v3468_v50 }
  0x9a   :  { %v1231_v16 = vmul.f32 %v3470_v51, %v3470_v51  ;;  %v1553_v7 = vadd.f32 %v1552_v41, %v3497_v29  ;;  %v1395_v41 = vmul.f32 %v3439_v36, %v3439_v36 }
  0x9b   :  { %v1228_v52 = vmul.f32 0.020408163, %v1213_v39  ;;  %v1379_v35 = vadd.f32 %v1378_v3, %v1377_v47  ;;  %v3504_v39 = vmul.f32 0.020408163, %v1369_v42  ;;  %v1397_v25 = vadd.f32 %v1396_v18, %v1386_v37  ;;  %v3518_v42 = vld [vmem:[%s4184_s2 + $0x118] sm:$0xff]  ;;  %v3532_v18 = vld [vmem:[%s4184_s2 + $0x168] sm:$0xff] }
  0x9c   :  { %v1233_v12 = vsub.f32 %v1229_v2, %v1231_v16  ;;  %4249 = vst [vmem:[#allocation29_spill] sm:$0xff] %v3518_v42  ;;  %v1394_v3 = vmul.f32 %v3411_v60, %v3411_v60  ;;  %v1565_v2 = vadd.f32 %v1564_v8, %v3502_v30  ;;  %4251 = vst [vmem:[#allocation31_spill] sm:$0xff] %v3532_v18 }
  0x9d   :  { %v1232_v17 = vsub.f32 %v1228_v52, %v1230_v53  ;;  %v1409_v52 = vadd.f32 %v1408_v28, %v1387_v38  ;;  %v3513_v53 = vld [vmem:[%s4184_s2 + $0x110] sm:$0xff]  ;;  %v1380_v47 = vrot.slane %v1379_v35, 1  ;;  %v1398_v38 = vadd.f32 %v1397_v25, %v1388_v13 }
  0x9e   :  { %4248 = vst [vmem:[#allocation28_spill] sm:$0xff] %v3513_v53  ;;  %v1236_v37 = vadd.f32 1e-05, %v1233_v12  ;;  %v1554_v8 = vadd.f32 %v1553_v7, %v3513_v53  ;;  %v1566_v12 = vadd.f32 %v1565_v2, %v3518_v42  ;;  %v3545_v25 = vld [vmem:[%s4184_s2 + $0x1b0] sm:$0xff] }
  0x9f   :  { %v1235_v24 = vadd.f32 1e-05, %v1232_v17  ;;  %v1410_v16 = vadd.f32 %v1409_v52, %v1389_v14  ;;  %v3527_v17 = vld [vmem:[%s4184_s2 + $0x160] sm:$0xff]  ;;  %v1381_v28 = vadd.f32 %v1380_v47, %v1379_v35  ;;  %v1399_v13 = vadd.f32 %v1398_v38, %v1390_v49  ;;  %4252 = vst [vmem:[#allocation32_spill] sm:$0xff] %v3545_v25  ;;  %v3550_v35 = vld [vmem:[%s4184_s2 + $0x1b8] sm:$0xff] }
  0xa0   :  { %4250 = vst [vmem:[#allocation30_spill] sm:$0xff] %v3527_v17  ;;  %4253 = vst [vmem:[#allocation33_spill] sm:$0xff] %v3550_v35  ;;  %v1555_v7 = vadd.f32 %v1554_v8, %v3527_v17  ;;  %v1567_v52 = vadd.f32 %v1566_v12, %v3532_v18  ;;  %v1576_v49 = vmul.f32 %v3463_v48, %v3463_v48  ;;  %v3563_v38 = vld [vmem:[%s4184_s2 + $0x200] sm:$0xff] }
  0xa1   :  { %2725 = vrsqrt.f32 %v1235_v24  ;;  %v1411_v14 = vadd.f32 %v1410_v16, %v1391_v54  ;;  %v3540_v24 = vmul.f32 %v3504_v39, %v3504_v39  ;;  %v1577_v54 = vmul.f32 %v3468_v50, %v3468_v50  ;;  %4254 = vst [vmem:[#allocation34_spill] sm:$0xff] %v3563_v38  ;;  %v3568_v16 = vld [vmem:[%s4184_s2 + $0x208] sm:$0xff] }
  0xa2   :  { %2727 = vrsqrt.f32 %v1236_v37  ;;  %v1400_v47 = vadd.f32 %v1399_v13, %v1392_v5  ;;  %v3558_v37 = vmul.f32 0.020408163, %v1381_v28  ;;  %4255 = vst [vmem:[#allocation35_spill] sm:$0xff] %v3568_v16  ;;  %v1578_v8 = vmul.f32 %v3479_v61, %v3479_v61 }
  0xa3   :  { %v1412_v2 = vadd.f32 %v1411_v14, %v1393_v6  ;;  %v1556_v12 = vadd.f32 %v1555_v7, %v3545_v25  ;;  %v1568_v5 = vadd.f32 %v1567_v52, %v3550_v35  ;;  %v1579_v6 = vmul.f32 %v3484_v62, %v3484_v62 }
  0xa4   :  { %v1580_v28 = vmul.f32 %v3497_v29, %v3497_v29  ;;  %v1401_v13 = vadd.f32 %v1400_v47, %v1394_v3  ;;  %v1581_v50 = vmul.f32 %v3502_v30, %v3502_v30  ;;  %v1582_v48 = vmul.f32 %v3513_v53, %v3513_v53  ;;  %v3595_v47 = vld [vmem:[%s4184_s2 + $0x30] sm:$0xff] }
  0xa5   :  { %v1413_v14 = vadd.f32 %v1412_v2, %v1395_v41  ;;  %v1557_v61 = vadd.f32 %v1556_v12, %v3563_v38  ;;  %v1569_v7 = vadd.f32 %v1568_v5, %v3568_v16  ;;  %v1583_v52 = vmul.f32 %v3518_v42, %v3518_v42  ;;  %v3600_v2 = vld [vmem:[%s4184_s2 + $0x80] sm:$0xff] }
  0xa6   :  { %v1584_v62 = vmul.f32 %v3527_v17, %v3527_v17  ;;  %v1402_v36 = vrot.slane %v1401_v13, 4  ;;  %v1585_v3 = vmul.f32 %v3532_v18, %v3532_v18  ;;  %v1586_v41 = vmul.f32 %v3545_v25, %v3545_v25 }
  0xa7   :  { %v1414_v29 = vrot.slane %v1413_v14, 4  ;;  %v1558_v12 = vrot.slane %v1557_v61, 4  ;;  %v1570_v5 = vrot.slane %v1569_v7, 4  ;;  %v1587_v17 = vmul.f32 %v3550_v35, %v3550_v35 }
  0xa8   :  { %v1588_v18 = vmul.f32 %v3563_v38, %v3563_v38  ;;  %v1403_v25 = vadd.f32 %v1402_v36, %v1401_v13  ;;  %v1590_v30 = vadd.f32 %v1578_v8, %v1576_v49  ;;  %v1602_v60 = vadd.f32 %v1579_v6, %v1577_v54  ;;  %v3618_v49 = vld [vmem:[%s4184_s2 + $0x120] sm:$0xff] }
  0xa9   :  { %v1415_v53 = vadd.f32 %v1414_v29, %v1413_v14  ;;  %v1559_v59 = vadd.f32 %v1558_v12, %v1557_v61  ;;  %v1571_v32 = vadd.f32 %v1570_v5, %v1569_v7  ;;  %v1589_v43 = vmul.f32 %v3568_v16, %v3568_v16  ;;  %v3624_v5 = vld [vmem:[%s4184_s2 + $0x170] sm:$0xff] }
  0xaa   :  { %v1746_v35 = vadd.f32 %v3600_v2, %v3595_v47  ;;  %v1404_v38 = vrot.slane %v1403_v25, 2  ;;  %v1591_v36 = vadd.f32 %v1590_v30, %v1580_v28  ;;  %v1603_v29 = vadd.f32 %v1602_v60, %v1581_v50 }
  0xab   :  { %v2726_v42 = vpop.eup %2725  ;;  %v1416_v31 = vrot.slane %v1415_v53, 2  ;;  %v1560_v8 = vrot.slane %v1559_v59, 2  ;;  %v1572_v61 = vrot.slane %v1571_v32, 2 }
  0xac   :  { %v2728_v21 = vpop.eup %2727  ;;  %v1747_v6 = vadd.f32 %v1746_v35, %v3609_v44  ;;  %v1405_v13 = vadd.f32 %v1404_v38, %v1403_v25  ;;  %v1592_v7 = vadd.f32 %v1591_v36, %v1582_v48  ;;  %v1604_v12 = vadd.f32 %v1603_v29, %v1583_v52 }
  0xad   :  { %v1241_v54 = vcombine.low %v2726_v42, %v2728_v21  ;;  %v1417_v14 = vadd.f32 %v1416_v31, %v1415_v53  ;;  %v1561_v50 = vadd.f32 %v1560_v8, %v1559_v59  ;;  %v1573_v30 = vadd.f32 %v1572_v61, %v1571_v32  ;;  %v1234_v21 = vld [vmem:[#allocation2] sm:$0x3]  ;;  %v3633_v32 = vld [vmem:[%s4184_s2 + $0x38] sm:$0xff]  ;;  %v3638_v59 = vld [vmem:[%s4184_s2 + $0x88] sm:$0xff] }
  0xae   :  { %v1748_v28 = vadd.f32 %v1747_v6, %v3618_v49  ;;  %v1406_v42 = vrot.slane %v1405_v13, 1  ;;  %v1593_v9 = vadd.f32 %v1592_v7, %v1584_v62  ;;  %v1605_v35 = vadd.f32 %v1604_v12, %v1585_v3 }
  0xaf   :  { %v1248_v60 = vrot.slane %v1241_v54, %v3454_v26  ;;  %v1418_v16 = vrot.slane %v1417_v14, 1  ;;  %v1562_v48 = vrot.slane %v1561_v50, 1  ;;  %v1574_v53 = vrot.slane %v1573_v30, 1 }
  0xb0   :  { %v1749_v25 = vadd.f32 %v1748_v28, %v3624_v5  ;;  %v1407_v38 = vadd.f32 %v1406_v42, %v1405_v13  ;;  %v1594_v36 = vadd.f32 %v1593_v9, %v1586_v41  ;;  %v1606_v29 = vadd.f32 %v1605_v35, %v1587_v17  ;;  %v3645_v9 = vld [vmem:[%s4184_s2 + $0x1c0] sm:$0xff] }
  0xb1   :  { %v1255_v31 = vrot.slane %v1248_v60, %v3454_v26  ;;  %v1419_v52 = vadd.f32 %v1418_v16, %v1417_v14  ;;  %v1425_v3 = vmul.f32 %v3558_v37, %v3558_v37  ;;  %v1563_v54 = vadd.f32 %v1562_v48, %v1561_v50 }
  0xb2   :  { %v1575_v8 = vadd.f32 %v1574_v53, %v1573_v30  ;;  %v1422_v17 = vmul.f32 0.020408163, %v1407_v38  ;;  %v1595_v41 = vadd.f32 %v1594_v36, %v1588_v18  ;;  %v1607_v61 = vadd.f32 %v1606_v29, %v1589_v43 }
  0xb3   :  { %v1257_v62 = vmul.f32 %v1255_v31, %v1234_v21  ;;  %v1423_v16 = vmul.f32 0.020408163, %v1419_v52  ;;  %v1758_v14 = vadd.f32 %v3638_v59, %v3633_v32  ;;  %v3652_v12 = vmul.f32 0.020408163, %v1563_v54 }
  0xb4   :  { %v1426_v7 = vsub.f32 %v1422_v17, %v3540_v24  ;;  %v3654_v60 = vmul.f32 0.020408163, %v1575_v8  ;;  %v1750_v50 = vadd.f32 %v1749_v25, %v3645_v9  ;;  %v1596_v28 = vrot.slane %v1595_v41, 4  ;;  %v1258_v8 = vld [vmem:[#allocation5] sm:$0x3] }
  0xb5   :  { %v1263_v6 = vrot.slane %v1257_v62, %v3450_v15  ;;  %v1267_v13 = vrot.slane %v1257_v62, %v3452_v27  ;;  %4256 = vst [vmem:[#allocation36_spill] sm:$0xff] %v3652_v12  ;;  %v1427_v43 = vsub.f32 %v1423_v16, %v1425_v3  ;;  %v1608_v24 = vrot.slane %v1607_v61, 4 }
  0xb6   :  { %4257 = vst [vmem:[#allocation37_spill] sm:$0xff] %v3654_v60 }
  0xb7   :  { %v1270_v30 = vmul.f32 %v1263_v6, %v3456_v40  ;;  %v1271_v18 = vmul.f32 %v1267_v13, %v3470_v51  ;;  %v1291_v42 = vmul.f32 %v1263_v6, %v3237_v55  ;;  %v1292_v35 = vmul.f32 %v1267_v13, %v3242_v56 }
  0xb8   :  { %v1293_v31 = vmul.f32 %v1263_v6, %v3247_v57  ;;  %v1294_v52 = vmul.f32 %v1267_v13, %v3252_v58  ;;  %v1295_v25 = vmul.f32 %v1263_v6, %v3270_v0  ;;  %v1296_v40 = vmul.f32 %v1267_v13, %v3275_v1 }
  0xb9   :  { %v1274_v38 = vcombine.low %v1270_v30, %v1271_v18  ;;  %v1297_v62 = vmul.f32 %v1263_v6, %v3299_v10  ;;  %v1298_v55 = vmul.f32 %v1267_v13, %v3304_v11  ;;  %v1299_v56 = vmul.f32 %v1263_v6, %v3332_v22 }
  0xba   :  { %v1300_v58 = vmul.f32 %v1267_v13, %v3337_v23  ;;  %v1301_v0 = vmul.f32 %v1263_v6, %v3359_v33  ;;  %v1429_v30 = vadd.f32 1e-05, %v1426_v7  ;;  %v1430_v18 = vadd.f32 1e-05, %v1427_v43  ;;  %v3682_v23 = vld [vmem:[%s4184_s2 + $0x210] sm:$0xff] }
  0xbb   :  { %v1281_v17 = vrot.slane %v1274_v38, %v3454_v26  ;;  %v1302_v33 = vmul.f32 %v1267_v13, %v3364_v34  ;;  %v1304_v38 = vmul.f32 %v1267_v13, %v3393_v46 }
  0xbc   :  { %2729 = vrsqrt.f32 %v1429_v30 }
  0xbd   :  { %v1288_v22 = vrot.slane %v1281_v17, %v3454_v26  ;;  %2731 = vrsqrt.f32 %v1430_v18 }
 0x11c   :  { %v2402_v21 = vpop.f32.mrb[0].mxu0 }
 0x11d   :  { %v2442_v48 = vpop.f32.mrb[0].mxu1  ;;  %v2403_v53 = vpop.f32.mrb[1].mxu0 }
 0x11e   :  { %v2404_v51 = vadd.f32 %v2403_v53, %v2402_v21  ;;  %v2443_v36 = vpop.f32.mrb[1].mxu1  ;;  %v2405_v29 = vpop.f32.mrb[2].mxu0  ;;  %v1597_v21 = vadd.f32 %v1596_v28, %v1595_v41  ;;  %v3677_v53 = vld [vmem:[%s4184_s2 + $0xd8] sm:$0xff]  ;;  %v1303_v41 = vmul.f32 %v1263_v6, %v3388_v45  ;;  %v1290_v28 = vsub.f32 %v1258_v8, %v1288_v22 }
 0x11f   :  { %v2444_v57 = vadd.f32 %v2443_v36, %v2442_v48  ;;  %v2445_v3 = vpop.f32.mrb[2].mxu1  ;;  %v2406_v54 = vpop.f32.mrb[3].mxu0  ;;  %v1609_v48 = vadd.f32 %v1608_v24, %v1607_v61  ;;  %4259 = vst [vmem:[#allocation39_spill] sm:$0xff] %v3677_v53  ;;  %v3691_v24 = vld [vmem:[%s4184_s2 + $0x128] sm:$0xff]  ;;  %v1751_v36 = vadd.f32 %v1750_v50, %v3682_v23  ;;  %v1759_v34 = vadd.f32 %v1758_v14, %v3677_v53 }
 0x120   :  { %v2407_v1 = vadd.f32 %v2406_v54, %v2405_v29  ;;  %v2446_v16 = vpop.f32.mrb[3].mxu1  ;;  %v1598_v7 = vrot.slane %v1597_v21, 2  ;;  %4261 = vst [vmem:[#allocation41_spill] sm:$0xff] %v3691_v24  ;;  %v1309_v45 = vrot.slane %v1290_v28, %v3450_v15  ;;  %v1313_v6 = vrot.slane %v1290_v28, %v3452_v27 }
 0x121   :  { %v3671_v10 = vadd.f32 %v2444_v57, %v2404_v51  ;;  %v2447_v11 = vadd.f32 %v2446_v16, %v2445_v3  ;;  %v1610_v61 = vrot.slane %v1609_v48, 2  ;;  %v3700_v29 = vmul.f32 %v3652_v12, %v3652_v12 }
 0x122   :  { %v1599_v51 = vadd.f32 %v1598_v7, %v1597_v21  ;;  %v3704_v57 = vmul.f32 %v3654_v60, %v3654_v60  ;;  %v1752_v13 = vrot.slane %v1751_v36, 4  ;;  %v1760_v50 = vadd.f32 %v1759_v34, %v3691_v24  ;;  %v3717_v34 = vld [vmem:[%s4184_s2 + $0x1c8] sm:$0xff] }
 0x123   :  { %4258 = vst [vmem:[#allocation38_spill] sm:$0xff] %v3671_v10  ;;  %v3686_v43 = vadd.f32 %v2447_v11, %v2407_v1  ;;  %v1611_v46 = vadd.f32 %v1610_v61, %v1609_v48  ;;  %v1316_v17 = vadd.f32 %v1309_v45, %v1291_v42  ;;  %v1317_v1 = vadd.f32 %v1313_v6, %v1292_v35  ;;  %v3710_v42 = vld [vmem:[%s4184_s2 + $0x178] sm:$0xff] }
 0x124   :  { %v2408_v3 = vpop.f32.mrb[4].mxu0  ;;  %v1600_v54 = vrot.slane %v1599_v51, 1  ;;  %v1318_v16 = vadd.f32 %v1309_v45, %v1293_v31  ;;  %v1319_v30 = vadd.f32 %v1313_v6, %v1294_v52  ;;  %v1320_v22 = vadd.f32 %v1309_v45, %v1295_v25  ;;  %4262 = vst [vmem:[#allocation42_spill] sm:$0xff] %v3710_v42  ;;  %4263 = vst [vmem:[#allocation43_spill] sm:$0xff] %v3717_v34 }
 0x125   :  { %4260 = vst [vmem:[#allocation40_spill] sm:$0xff] %v3686_v43  ;;  %v2448_v8 = vpop.f32.mrb[4].mxu1  ;;  %v2409_v14 = vpop.f32.mrb[5].mxu0  ;;  %v1321_v7 = vadd.f32 %v1313_v6, %v1296_v40  ;;  %v1322_v28 = vadd.f32 %v1309_v45, %v1297_v62  ;;  %v1323_v10 = vadd.f32 %v1313_v6, %v1298_v55  ;;  %v1324_v48 = vadd.f32 %v1309_v45, %v1299_v56 }
 0x126   :  { %v2410_v18 = vadd.f32 %v2409_v14, %v2408_v3  ;;  %v2449_v21 = vpop.f32.mrb[5].mxu1  ;;  %v2411_v11 = vpop.f32.mrb[6].mxu0  ;;  %v1325_v61 = vadd.f32 %v1313_v6, %v1300_v58  ;;  %1330 = vst [vmem:[#allocation7] sm:$0xff] %v1316_v17  ;;  %1331 = vst [vmem:[#allocation7 + $0x8] sm:$0xff] %v1317_v1  ;;  %v1326_v52 = vadd.f32 %v1309_v45, %v1301_v0  ;;  %v1612_v0 = vrot.slane %v1611_v46, 1 }
 0x127   :  { %v2450_v60 = vadd.f32 %v2449_v21, %v2448_v8  ;;  %v2451_v12 = vpop.f32.mrb[6].mxu1  ;;  %v2412_v43 = vpop.f32.mrb[7].mxu0  ;;  %1332 = vst [vmem:[#allocation7 + $0x58] sm:$0xff] %v1318_v16  ;;  %1333 = vst [vmem:[#allocation7 + $0x60] sm:$0xff] %v1319_v30  ;;  %v1327_v25 = vadd.f32 %v1313_v6, %v1302_v33  ;;  %v1328_v40 = vadd.f32 %v1309_v45, %v1303_v41  ;;  %v1428_v16 = vld [vmem:[#allocation2 + $0x2] sm:$0x3] }
 0x128   :  { %v2413_v35 = vadd.f32 %v2412_v43, %v2411_v11  ;;  %v2452_v31 = vpop.f32.mrb[7].mxu1  ;;  %1334 = vst [vmem:[#allocation7 + $0xb0] sm:$0xff] %v1320_v22  ;;  %1335 = vst [vmem:[#allocation7 + $0xb8] sm:$0xff] %v1321_v7  ;;  %v1329_v56 = vadd.f32 %v1313_v6, %v1304_v38  ;;  %v1601_v58 = vadd.f32 %v1600_v54, %v1599_v51  ;;  %v2730_v43 = vpop.eup %2729  ;;  %v3727_v51 = vld [vmem:[%s4184_s2 + $0x218] sm:$0xff] }
 0x129   :  { %1336 = vst [vmem:[#allocation7 + $0x108] sm:$0xff] %v1322_v28  ;;  %v3712_v62 = vadd.f32 %v2450_v60, %v2410_v18  ;;  %v2453_v55 = vadd.f32 %v2452_v31, %v2451_v12  ;;  %1337 = vst [vmem:[#allocation7 + $0x110] sm:$0xff] %v1323_v10  ;;  %v1753_v33 = vadd.f32 %v1752_v13, %v1751_v36  ;;  %v2732_v10 = vpop.eup %2731 }
 0x12a   :  { %1338 = vst [vmem:[#allocation7 + $0x160] sm:$0xff] %v1324_v48  ;;  %1339 = vst [vmem:[#allocation7 + $0x168] sm:$0xff] %v1325_v61  ;;  %v1761_v60 = vadd.f32 %v1760_v50, %v3710_v42  ;;  %v1770_v12 = vmul.f32 %v3595_v47, %v3595_v47  ;;  %v1616_v38 = vmul.f32 0.020408163, %v1601_v58  ;;  %v1771_v45 = vmul.f32 %v3633_v32, %v3633_v32 }
 0x12b   :  { %1340 = vst [vmem:[#allocation7 + $0x1b8] sm:$0xff] %v1326_v52  ;;  %1341 = vst [vmem:[#allocation7 + $0x1c0] sm:$0xff] %v1327_v25  ;;  %v3722_v41 = vadd.f32 %v2453_v55, %v2413_v35  ;;  %v1772_v36 = vmul.f32 %v3600_v2, %v3600_v2  ;;  %v1435_v6 = vcombine.low %v2730_v43, %v2732_v10  ;;  %v1754_v54 = vrot.slane %v1753_v33, 2 }
 0x12c   :  { %1342 = vst [vmem:[#allocation7 + $0x210] sm:$0xff] %v1328_v40  ;;  %1343 = vst [vmem:[#allocation7 + $0x218] sm:$0xff] %v1329_v56  ;;  %v1613_v3 = vadd.f32 %v1612_v0, %v1611_v46  ;;  %v1762_v47 = vadd.f32 %v1761_v60, %v3717_v34  ;;  %v1620_v13 = vsub.f32 %v1616_v38, %v3700_v29  ;;  %v2414_v1 = vpop.f32.mrb[8].mxu0 }
 0x12d   :  { %4264 = vst [vmem:[#allocation44_spill] sm:$0xff] %v3727_v51  ;;  %v1773_v50 = vmul.f32 %v3638_v59, %v3638_v59  ;;  %v1774_v8 = vmul.f32 %v3609_v44, %v3609_v44  ;;  %v1775_v14 = vmul.f32 %v3677_v53, %v3677_v53  ;;  %v1442_v32 = vrot.slane %v1435_v6, %v3454_v26  ;;  %v2454_v18 = vpop.f32.mrb[8].mxu1  ;;  %v2415_v21 = vpop.f32.mrb[9].mxu0 }
 0x12e   :  { %v1617_v17 = vmul.f32 0.020408163, %v1613_v3  ;;  %v1755_v2 = vadd.f32 %v1754_v54, %v1753_v33  ;;  %v1763_v46 = vadd.f32 %v1762_v47, %v3727_v51  ;;  %v1623_v30 = vadd.f32 1e-05, %v1620_v13  ;;  %v2455_v48 = vpop.f32.mrb[9].mxu1  ;;  %v2417_v61 = vpop.f32.mrb[10].mxu0 }
 0x12f   :  { %v3745_v29 = vmul.f32 %v3618_v49, %v3618_v49  ;;  %v3749_v59 = vmul.f32 %v3691_v24, %v3691_v24  ;;  %v3753_v44 = vmul.f32 %v3624_v5, %v3624_v5  ;;  %v1449_v11 = vrot.slane %v1442_v32, %v3454_v26  ;;  %v2457_v25 = vpop.f32.mrb[10].mxu1 }
 0x130   :  { %v1621_v22 = vsub.f32 %v1617_v17, %v3704_v57  ;;  %v1764_v7 = vrot.slane %v1763_v46, 4  ;;  %v3759_v28 = vmul.f32 %v3710_v42, %v3710_v42  ;;  %v2416_v49 = vadd.f32 %v2415_v21, %v2414_v1  ;;  %v2418_v57 = vpop.f32.mrb[11].mxu0  ;;  %v2458_v58 = vpop.f32.mrb[11].mxu1  ;;  %v4265_v1 = vld [vmem:[#allocation11_spill] sm:$0xff]  ;;  %v4297_v42 = vld [vmem:[#allocation33_spill] sm:$0xff] }
 0x131   :  { %v1756_v35 = vrot.slane %v1755_v2, 1  ;;  %v3763_v31 = vmul.f32 %v3645_v9, %v3645_v9  ;;  %v3767_v5 = vmul.f32 %v3717_v34, %v3717_v34  ;;  %v2456_v52 = vadd.f32 %v2455_v48, %v2454_v18  ;;  %v4269_v18 = vld [vmem:[#allocation14_spill] sm:$0xff]  ;;  %v4271_v48 = vld [vmem:[#allocation16_spill] sm:$0xff] }
 0x132   :  { %v1451_v40 = vmul.f32 %v1449_v11, %v1428_v16  ;;  %v1624_v55 = vadd.f32 1e-05, %v1621_v22  ;;  %2733 = vrsqrt.f32 %v1623_v30  ;;  %v2419_v56 = vadd.f32 %v2418_v57, %v2417_v61  ;;  %v4268_v30 = vld [vmem:[#allocation15_spill] sm:$0xff] }
 0x133   :  { %v1765_v43 = vadd.f32 %v1764_v7, %v1763_v46  ;;  %v1784_v0 = vadd.f32 %v1772_v36, %v1770_v12  ;;  %v1796_v33 = vadd.f32 %v1773_v50, %v1771_v45  ;;  %v3769_v60 = vadd.f32 %v2456_v52, %v2416_v49  ;;  %v4270_v7 = vld [vmem:[#allocation17_spill] sm:$0xff]  ;;  %v3814_v52 = vld [vmem:[%s4184_s2 + $0xe0] sm:$0xff] }
 0x134   :  { %v2459_v10 = vadd.f32 %v2458_v58, %v2457_v25  ;;  %v1457_v9 = vrot.slane %v1451_v40, %v3450_v15  ;;  %v1461_v38 = vrot.slane %v1451_v40, %v3452_v27  ;;  %2735 = vrsqrt.f32 %v1624_v55  ;;  %v2420_v21 = vpop.f32.mrb[12].mxu0  ;;  %v1452_v40 = vld [vmem:[#allocation5 + $0x2] sm:$0x3]  ;;  %v4272_v55 = vld [vmem:[#allocation19_spill] sm:$0xff] }
 0x135   :  { %v1757_v6 = vadd.f32 %v1756_v35, %v1755_v2  ;;  %v3775_v3 = vmul.f32 %v3682_v23, %v3682_v23  ;;  %v3779_v54 = vmul.f32 %v3727_v51, %v3727_v51  ;;  %v1766_v36 = vrot.slane %v1765_v43, 2  ;;  %v2460_v11 = vpop.f32.mrb[12].mxu1  ;;  %v2421_v25 = vpop.f32.mrb[13].mxu0 }
 0x136   :  { %v3781_v47 = vadd.f32 %v2459_v10, %v2419_v56  ;;  %v1464_v12 = vmul.f32 %v1457_v9, %v3504_v39  ;;  %v1465_v45 = vmul.f32 %v1461_v38, %v3558_v37  ;;  %v3786_v13 = vmul.f32 %v1457_v9, %v3265_v63  ;;  %v3797_v39 = vld [vmem:[%s4184_s2 + $0x40] sm:$0xff]  ;;  %v3802_v63 = vld [vmem:[%s4184_s2 + $0x90] sm:$0xff]  ;;  %v2461_v57 = vpop.f32.mrb[13].mxu1 }
 0x137   :  { %v3789_v50 = vmul.f32 %v1461_v38, %v3317_v19  ;;  %v1785_v32 = vadd.f32 %v1784_v0, %v1774_v8  ;;  %v1797_v23 = vadd.f32 %v1796_v33, %v1775_v14  ;;  %v1487_v2 = vmul.f32 %v1457_v9, %v3284_v4  ;;  %v4266_v19 = vld [vmem:[#allocation13_spill] sm:$0xff]  ;;  %v4267_v8 = vld [vmem:[#allocation12_spill] sm:$0xff] }
 0x138   :  { %v1468_v17 = vcombine.low %v1464_v12, %v1465_v45  ;;  %v1488_v46 = vmul.f32 %v1461_v38, %v3322_v20  ;;  %v1489_v16 = vmul.f32 %v1457_v9, %v4265_v1  ;;  %v1490_v37 = vmul.f32 %v1461_v38, %v4266_v19  ;;  %v3822_v33 = vld [vmem:[%s4184_s2 + $0x48] sm:$0xff] }
 0x139   :  { %v1491_v14 = vmul.f32 %v1457_v9, %v4267_v8  ;;  %v1492_v4 = vmul.f32 %v1461_v38, %v4268_v30  ;;  %v1493_v20 = vmul.f32 %v1457_v9, %v4269_v18  ;;  %v1494_v49 = vmul.f32 %v1461_v38, %v4270_v7  ;;  %v4273_v8 = vld [vmem:[#allocation18_spill] sm:$0xff] }
 0x13a   :  { %v1475_v22 = vrot.slane %v1468_v17, %v3454_v26  ;;  %v1495_v61 = vmul.f32 %v1457_v9, %v4271_v48  ;;  %v1767_v35 = vadd.f32 %v1766_v36, %v1765_v43  ;;  %v1496_v56 = vmul.f32 %v1461_v38, %v4272_v55  ;;  %v3827_v43 = vld [vmem:[%s4184_s2 + $0x98] sm:$0xff]  ;;  %v3837_v17 = vld [vmem:[%s4184_s2 + $0x130] sm:$0xff] }
 0x13b   :  { %v1786_v58 = vadd.f32 %v1785_v32, %v3745_v29  ;;  %v1798_v0 = vadd.f32 %v1797_v23, %v3749_v59  ;;  %v1940_v10 = vadd.f32 %v3802_v63, %v3797_v39  ;;  %v2422_v45 = vadd.f32 %v2421_v25, %v2420_v21  ;;  %v2423_v29 = vpop.f32.mrb[14].mxu0  ;;  %v2463_v32 = vpop.f32.mrb[14].mxu1 }
 0x13c   :  { %v3831_v12 = vpop.eup %2733  ;;  %v2462_v36 = vadd.f32 %v2461_v57, %v2460_v11  ;;  %v1482_v59 = vrot.slane %v1475_v22, %v3454_v26  ;;  %v1768_v23 = vrot.slane %v1767_v35, 1  ;;  %v2424_v1 = vpop.f32.mrb[15].mxu0  ;;  %v1497_v30 = vmul.f32 %v1457_v9, %v4273_v8  ;;  %v4274_v22 = vld [vmem:[#allocation20_spill] sm:$0xff]  ;;  %v3854_v9 = vld [vmem:[%s4184_s2 + $0x180] sm:$0xff] }
 0x13d   :  { %v2464_v19 = vpop.f32.mrb[15].mxu1  ;;  %v1787_v18 = vadd.f32 %v1786_v58, %v3753_v44  ;;  %v1799_v7 = vadd.f32 %v1798_v0, %v3759_v28  ;;  %v1941_v21 = vadd.f32 %v1940_v10, %v3814_v52  ;;  %v1498_v25 = vmul.f32 %v1461_v38, %v4274_v22  ;;  %v3849_v57 = vld [vmem:[%s4184_s2 + $0xe8] sm:$0xff]  ;;  %v2482_v8 = vpop.f32.mrb[16].mxu0 }
 0x13e   :  { %v3843_v11 = vadd.f32 %v2462_v36, %v2422_v45  ;;  %v1484_v48 = vsub.f32 %v1452_v40, %v1482_v59  ;;  %v1952_v44 = vadd.f32 %v3827_v43, %v3822_v33  ;;  %v2736_v28 = vpop.eup %2735  ;;  %v3860_v58 = vmul.f32 0.020408163, %v1757_v6 }
 0x13f   :  { %v1788_v55 = vadd.f32 %v1787_v18, %v3763_v31  ;;  %v1800_v40 = vadd.f32 %v1799_v7, %v3767_v5  ;;  %v1942_v38 = vadd.f32 %v1941_v21, %v3837_v17  ;;  %v1629_v45 = vcombine.low %v3831_v12, %v2736_v28 }
 0x140   :  { %4275 = vst [vmem:[#allocation11_spill] sm:$0xff] %v3860_v58  ;;  %v1503_v0 = vrot.slane %v1484_v48, %v3450_v15  ;;  %v1507_v10 = vrot.slane %v1484_v48, %v3452_v27  ;;  %v1769_v36 = vadd.f32 %v1768_v23, %v1767_v35  ;;  %v1953_v31 = vadd.f32 %v1952_v44, %v3849_v57  ;;  %v2483_v35 = vpop.f32.mrb[17].mxu0  ;;  %v2522_v23 = vpop.f32.mrb[16].mxu1 }
 0x141   :  { %v1789_v29 = vadd.f32 %v1788_v55, %v3775_v3  ;;  %v1801_v32 = vadd.f32 %v1800_v40, %v3779_v54  ;;  %v1943_v59 = vadd.f32 %v1942_v38, %v3854_v9  ;;  %v4279_v55 = vld [vmem:[#allocation38_spill] sm:$0xff] }
 0x142   :  { %v1510_v5 = vadd.f32 %v1503_v0, %v3786_v13  ;;  %v1511_v6 = vadd.f32 %v1507_v10, %v3789_v50  ;;  %v1512_v1 = vadd.f32 %v1503_v0, %v1487_v2  ;;  %v1513_v19 = vadd.f32 %v1507_v10, %v1488_v46  ;;  %v3875_v13 = vld [vmem:[%s4184_s2 + $0x1d0] sm:$0xff]  ;;  %v2485_v2 = vpop.f32.mrb[18].mxu0  ;;  %v2523_v46 = vpop.f32.mrb[17].mxu1 }
 0x143   :  { %v1514_v18 = vadd.f32 %v1503_v0, %v1489_v16  ;;  %v1515_v7 = vadd.f32 %v1507_v10, %v1490_v37  ;;  %v1516_v21 = vadd.f32 %v1503_v0, %v1491_v14  ;;  %v1517_v12 = vadd.f32 %v1507_v10, %v1492_v4  ;;  %4276 = vst [vmem:[#allocation13_spill] sm:$0xff] %v3875_v13  ;;  %v1622_v14 = vld [vmem:[#allocation2 + $0x4] sm:$0x3] }
 0x144   :  { %v1518_v3 = vadd.f32 %v1503_v0, %v1493_v20  ;;  %v1519_v48 = vadd.f32 %v1507_v10, %v1494_v49  ;;  %v1520_v54 = vadd.f32 %v1503_v0, %v1495_v61  ;;  %v1521_v22 = vadd.f32 %v1507_v10, %v1496_v56  ;;  %1524 = vst [vmem:[#allocation7 + $0x10] sm:$0xff] %v1510_v5  ;;  %v3881_v20 = vld [vmem:[%s4184_s2 + $0x138] sm:$0xff]  ;;  %v3886_v49 = vld [vmem:[%s4184_s2 + $0x220] sm:$0xff]  ;;  %v2486_v61 = vpop.f32.mrb[19].mxu0 }
 0x145   :  { %1525 = vst [vmem:[#allocation7 + $0x18] sm:$0xff] %v1511_v6  ;;  %1526 = vst [vmem:[#allocation7 + $0x68] sm:$0xff] %v1512_v1  ;;  %v2484_v50 = vadd.f32 %v2483_v35, %v2482_v8  ;;  %v1522_v16 = vadd.f32 %v1503_v0, %v1497_v30  ;;  %v1523_v37 = vadd.f32 %v1507_v10, %v1498_v25  ;;  %v2525_v30 = vpop.f32.mrb[18].mxu1  ;;  %v1790_v25 = vrot.slane %v1789_v29, 4  ;;  %v4280_v8 = vld [vmem:[#allocation40_spill] sm:$0xff] }
 0x146   :  { %1527 = vst [vmem:[#allocation7 + $0x70] sm:$0xff] %v1513_v19  ;;  %1528 = vst [vmem:[#allocation7 + $0xc0] sm:$0xff] %v1514_v18  ;;  %v1636_v4 = vrot.slane %v1629_v45, %v3454_v26  ;;  %v2524_v56 = vadd.f32 %v2523_v46, %v2522_v23  ;;  %v1802_v44 = vrot.slane %v1801_v32, 4  ;;  %v3888_v28 = vmul.f32 0.020408163, %v1769_v36  ;;  %v2526_v0 = vpop.f32.mrb[19].mxu1 }
 0x147   :  { %1529 = vst [vmem:[#allocation7 + $0xc8] sm:$0xff] %v1515_v7  ;;  %1530 = vst [vmem:[#allocation7 + $0x118] sm:$0xff] %v1516_v21  ;;  %v993_v40 = vadd.f32 %v2484_v50, %v4279_v55  ;;  %v2487_v38 = vadd.f32 %v2486_v61, %v2485_v2  ;;  %v3895_v45 = vld [vmem:[%s4184_s2 + $0x188] sm:$0xff]  ;;  %v1944_v5 = vadd.f32 %v1943_v59, %v3875_v13 }
 0x148   :  { %1531 = vst [vmem:[#allocation7 + $0x120] sm:$0xff] %v1517_v12  ;;  %4277 = vst [vmem:[#allocation12_spill] sm:$0xff] %v3886_v49  ;;  %v1643_v10 = vrot.slane %v1636_v4, %v3454_v26  ;;  %v2527_v6 = vadd.f32 %v2526_v0, %v2525_v30  ;;  %v1791_v1 = vadd.f32 %v1790_v25, %v1789_v29  ;;  %v4283_v4 = vld [vmem:[#allocation36_spill] sm:$0xff] }
 0x149   :  { %1532 = vst [vmem:[#allocation7 + $0x170] sm:$0xff] %v1518_v3  ;;  %1533 = vst [vmem:[#allocation7 + $0x178] sm:$0xff] %v1519_v48  ;;  %v1803_v19 = vadd.f32 %v1802_v44, %v1801_v32  ;;  %v1954_v36 = vadd.f32 %v1953_v31, %v3881_v20  ;;  %v996_v18 = vadd.f32 %v2487_v38, %v4280_v8  ;;  %v2488_v48 = vpop.f32.mrb[20].mxu0  ;;  %v3911_v32 = vld [vmem:[%s4184_s2 + $0x1d8] sm:$0xff] }
 0x14a   :  { %1534 = vst [vmem:[#allocation7 + $0x1c8] sm:$0xff] %v1520_v54  ;;  %1535 = vst [vmem:[#allocation7 + $0x1d0] sm:$0xff] %v1521_v22  ;;  %v3900_v7 = vadd.f32 %v2524_v56, %v993_v40  ;;  %v1645_v21 = vmul.f32 %v1643_v10, %v1622_v14  ;;  %v1945_v12 = vadd.f32 %v1944_v5, %v3886_v49  ;;  %v1792_v35 = vrot.slane %v1791_v1, 2  ;;  %v2489_v31 = vpop.f32.mrb[21].mxu0  ;;  %v2528_v22 = vpop.f32.mrb[20].mxu1  ;;  %v4284_v56 = vld [vmem:[#allocation37_spill] sm:$0xff] }
 0x14b   :  { %4278 = vst [vmem:[#allocation15_spill] sm:$0xff] %v3888_v28  ;;  %1536 = vst [vmem:[#allocation7 + $0x220] sm:$0xff] %v1522_v16  ;;  %v1804_v23 = vrot.slane %v1803_v19, 2  ;;  %v1955_v3 = vadd.f32 %v1954_v36, %v3895_v45  ;;  %v3904_v54 = vadd.f32 %v2527_v6, %v996_v18  ;;  %v3915_v50 = vmul.f32 %v3860_v58, %v3860_v58  ;;  %v2529_v14 = vpop.f32.mrb[21].mxu1  ;;  %v4285_v38 = vld [vmem:[#allocation22_spill] sm:$0xff]  ;;  %v4299_v49 = vld [vmem:[#allocation35_spill] sm:$0xff] }
 0x14c   :  { %1537 = vst [vmem:[#allocation7 + $0x228] sm:$0xff] %v1523_v37  ;;  %v1651_v59 = vrot.slane %v1645_v21, %v3450_v15  ;;  %v1655_v29 = vrot.slane %v1645_v21, %v3452_v27  ;;  %4282 = vst [vmem:[#allocation17_spill] sm:$0xff] %v3911_v32  ;;  %v3919_v2 = vmul.f32 %v3888_v28, %v3888_v28  ;;  %v1946_v46 = vrot.slane %v1945_v12, 4  ;;  %v2491_v37 = vpop.f32.mrb[22].mxu0  ;;  %v2531_v40 = vpop.f32.mrb[22].mxu1  ;;  %v4286_v21 = vld [vmem:[#allocation23_spill] sm:$0xff] }
 0x14d   :  { %4281 = vst [vmem:[#allocation14_spill] sm:$0xff] %v3904_v54  ;;  %v2490_v16 = vadd.f32 %v2489_v31, %v2488_v48  ;;  %v1793_v25 = vadd.f32 %v1792_v35, %v1791_v1  ;;  %v2492_v44 = vpop.f32.mrb[23].mxu0  ;;  %v2530_v55 = vadd.f32 %v2529_v14, %v2528_v22  ;;  %v1805_v10 = vadd.f32 %v1804_v23, %v1803_v19  ;;  %v2532_v8 = vpop.f32.mrb[23].mxu1  ;;  %v4289_v35 = vld [vmem:[#allocation26_spill] sm:$0xff]  ;;  %v4290_v23 = vld [vmem:[#allocation27_spill] sm:$0xff] }
 0x14e   :  { %v1658_v61 = vmul.f32 %v1651_v59, %v4283_v4  ;;  %v1659_v30 = vmul.f32 %v1655_v29, %v4284_v56  ;;  %v1679_v0 = vmul.f32 %v1651_v59, %v4285_v38  ;;  %v1956_v5 = vadd.f32 %v1955_v3, %v3911_v32  ;;  %v4287_v4 = vld [vmem:[#allocation24_spill] sm:$0xff]  ;;  %v4288_v56 = vld [vmem:[#allocation25_spill] sm:$0xff]  ;;  %v2534_v34 = vpop.f32.mrb[24].mxu1 }
 0x14f   :  { %v1001_v6 = vadd.f32 %v2490_v16, %v3712_v62  ;;  %v2493_v36 = vadd.f32 %v2492_v44, %v2491_v37  ;;  %v1680_v48 = vmul.f32 %v1655_v29, %v4286_v21  ;;  %v2533_v31 = vadd.f32 %v2532_v8, %v2531_v40  ;;  %v3938_v3 = vld [vmem:[%s4184_s2 + $0x228] sm:$0xff]  ;;  %v1646_v16 = vld [vmem:[#allocation5 + $0x4] sm:$0x3]  ;;  %v4294_v40 = vld [vmem:[#allocation30_spill] sm:$0xff]  ;;  %v2535_v28 = vpop.f32.mrb[25].mxu1 }
 0x150   :  { %v1662_v18 = vcombine.low %v1658_v61, %v1659_v30  ;;  %v1681_v51 = vmul.f32 %v1651_v59, %v4287_v4  ;;  %v1682_v1 = vmul.f32 %v1655_v29, %v4288_v56  ;;  %v1683_v22 = vmul.f32 %v1651_v59, %v4289_v35  ;;  %4291 = vst [vmem:[#allocation16_spill] sm:$0xff] %v3938_v3  ;;  %v4292_v37 = vld [vmem:[#allocation28_spill] sm:$0xff]  ;;  %v4293_v30 = vld [vmem:[#allocation29_spill] sm:$0xff]  ;;  %v4295_v21 = vld [vmem:[#allocation31_spill] sm:$0xff]  ;;  %v2537_v54 = vpop.f32.mrb[26].mxu1 }
 0x151   :  { %v1004_v14 = vadd.f32 %v2493_v36, %v3722_v41  ;;  %v3931_v38 = vadd.f32 %v2530_v55, %v1001_v6  ;;  %v1684_v62 = vmul.f32 %v1655_v29, %v4290_v23  ;;  %v1685_v61 = vmul.f32 %v1651_v59, %v4292_v37  ;;  %v2494_v55 = vpop.f32.mrb[24].mxu0  ;;  %v3944_v6 = vpop.permute.xlu0 %2134  ;;  %v4296_v4 = vld [vmem:[#allocation32_spill] sm:$0xff] }
 0x152   :  { %v1669_v19 = vrot.slane %v1662_v18, %v3454_v26  ;;  %v1686_v44 = vmul.f32 %v1655_v29, %v4293_v30  ;;  %v1687_v8 = vmul.f32 %v1651_v59, %v4294_v40  ;;  %v1688_v41 = vmul.f32 %v1655_v29, %v4295_v21  ;;  %v2495_v23 = vpop.f32.mrb[25].mxu0 }
 0x153   :  { %v3946_v36 = vadd.f32 %v2533_v31, %v1004_v14  ;;  %v1689_v56 = vmul.f32 %v1651_v59, %v4296_v4  ;;  %v1794_v35 = vrot.slane %v1793_v25, 1  ;;  %v1690_v37 = vmul.f32 %v1655_v29, %v4297_v42  ;;  %v2497_v53 = vpop.f32.mrb[26].mxu0  ;;  %v4298_v14 = vld [vmem:[#allocation34_spill] sm:$0xff] }
 0x154   :  { %v1676_v18 = vrot.slane %v1669_v19, %v3454_v26  ;;  %v1806_v24 = vrot.slane %v1805_v10, 1  ;;  %v3951_v30 = vadd.f32 %v1946_v46, %v1945_v12  ;;  %v3954_v40 = vadd.f32 %v1956_v5, %v3938_v3  ;;  %v2498_v26 = vpop.f32.mrb[27].mxu0  ;;  %v2538_v5 = vpop.f32.mrb[27].mxu1 }
 0x155   :  { %v2496_v21 = vadd.f32 %v2495_v23, %v2494_v55  ;;  %v1691_v58 = vmul.f32 %v1651_v59, %v4298_v14  ;;  %v1795_v19 = vadd.f32 %v1794_v35, %v1793_v25  ;;  %v2536_v4 = vadd.f32 %v2535_v28, %v2534_v34  ;;  %v3966_v35 = vpop.permute.xlu0 %2136 }
 0x156   :  { %v1678_v31 = vsub.f32 %v1646_v16, %v1676_v18  ;;  %v1692_v32 = vmul.f32 %v1655_v29, %v4299_v49  ;;  %v1807_v13 = vadd.f32 %v1806_v24, %v1805_v10  ;;  %v1948_v42 = vrot.slane %v3951_v30, 2 }
 0x157   :  { %v1009_v12 = vadd.f32 %v2496_v21, %v3769_v60  ;;  %v2499_v46 = vadd.f32 %v2498_v26, %v2497_v53  ;;  %v2539_v16 = vadd.f32 %v2538_v5, %v2537_v54  ;;  %v1810_v18 = vmul.f32 0.020408163, %v1795_v19  ;;  %v2500_v53 = vpop.f32.mrb[28].mxu0 }
 0x158   :  { %v1697_v55 = vrot.slane %v1678_v31, %v3450_v15  ;;  %v1701_v23 = vrot.slane %v1678_v31, %v3452_v27  ;;  %v1811_v59 = vmul.f32 0.020408163, %v1807_v13  ;;  %v1958_v25 = vrot.slane %v3954_v40, 4  ;;  %v2501_v14 = vpop.f32.mrb[29].mxu0 }
 0x159   :  { %v1012_v34 = vadd.f32 %v2499_v46, %v3781_v47  ;;  %v3964_v28 = vadd.f32 %v2536_v4, %v1009_v12  ;;  %v2540_v47 = vpop.f32.mrb[28].mxu1  ;;  %v1966_v5 = vmul.f32 %v3802_v63, %v3802_v63 }
 0x15a   :  { %v1704_v24 = vadd.f32 %v1697_v55, %v1679_v0  ;;  %v1705_v49 = vadd.f32 %v1701_v23, %v1680_v48  ;;  %v1706_v29 = vadd.f32 %v1697_v55, %v1681_v51  ;;  %v1707_v10 = vadd.f32 %v1701_v23, %v1682_v1  ;;  %v2503_v1 = vpop.f32.mrb[30].mxu0 }
 0x15b   :  { %v1708_v60 = vadd.f32 %v1697_v55, %v1683_v22  ;;  %v1709_v26 = vadd.f32 %v1701_v23, %v1684_v62  ;;  %v3968_v21 = vadd.f32 %v2539_v16, %v1012_v34  ;;  %v1710_v54 = vadd.f32 %v1697_v55, %v1685_v61  ;;  %v2541_v22 = vpop.f32.mrb[29].mxu1 }
 0x15c   :  { %v1711_v31 = vadd.f32 %v1701_v23, %v1686_v44  ;;  %v1712_v13 = vadd.f32 %v1697_v55, %v1687_v8  ;;  %1718 = vst [vmem:[#allocation7 + $0x20] sm:$0xff] %v1704_v24  ;;  %1719 = vst [vmem:[#allocation7 + $0x28] sm:$0xff] %v1705_v49  ;;  %v1713_v19 = vadd.f32 %v1701_v23, %v1688_v41  ;;  %v2504_v8 = vpop.f32.mrb[31].mxu0 }
 0x15d   :  { %v1714_v4 = vadd.f32 %v1697_v55, %v1689_v56  ;;  %v1715_v0 = vadd.f32 %v1701_v23, %v1690_v37  ;;  %v1716_v48 = vadd.f32 %v1697_v55, %v1691_v58  ;;  %1720 = vst [vmem:[#allocation7 + $0x78] sm:$0xff] %v1706_v29  ;;  %1721 = vst [vmem:[#allocation7 + $0x80] sm:$0xff] %v1707_v10  ;;  %v2543_v56 = vpop.f32.mrb[30].mxu1  ;;  %v2576_v34 = vpop.f32.mrb[32].mxu0 }
 0x15e   :  { %1722 = vst [vmem:[#allocation7 + $0xd0] sm:$0xff] %v1708_v60  ;;  %1723 = vst [vmem:[#allocation7 + $0xd8] sm:$0xff] %v1709_v26  ;;  %v2502_v51 = vadd.f32 %v2501_v14, %v2500_v53  ;;  %v1717_v62 = vadd.f32 %v1701_v23, %v1692_v32  ;;  %v1814_v61 = vsub.f32 %v1810_v18, %v3915_v50  ;;  %v2544_v46 = vpop.f32.mrb[31].mxu1  ;;  %v2143_v18 = vpop.permute.xlu0 %2142 }
 0x15f   :  { %1724 = vst [vmem:[#allocation7 + $0x128] sm:$0xff] %v1710_v54  ;;  %1725 = vst [vmem:[#allocation7 + $0x130] sm:$0xff] %v1711_v31  ;;  %v1815_v44 = vsub.f32 %v1811_v59, %v3919_v2  ;;  %v2542_v41 = vadd.f32 %v2541_v22, %v2540_v47  ;;  %v1949_v58 = vadd.f32 %v1948_v42, %v3951_v30  ;;  %v2139_v42 = vpop.permute.xlu1 %2138  ;;  %v2580_v29 = vpop.f32.mrb[32].mxu1 }
 0x160   :  { %1726 = vst [vmem:[#allocation7 + $0x180] sm:$0xff] %v1712_v13  ;;  %1727 = vst [vmem:[#allocation7 + $0x188] sm:$0xff] %v1713_v19  ;;  %v1959_v37 = vadd.f32 %v1958_v25, %v3954_v40  ;;  %v1964_v32 = vmul.f32 %v3797_v39, %v3797_v39  ;;  %v1017_v12 = vadd.f32 %v2502_v51, %v3843_v11  ;;  %v1817_v50 = vadd.f32 1e-05, %v1814_v61  ;;  %v1120_v10 = vpop.f32.mrb[33].mxu0  ;;  %v1136_v13 = vpop.f32.mrb[33].mxu1 }
 0x161   :  { %1728 = vst [vmem:[#allocation7 + $0x1d8] sm:$0xff] %v1714_v4  ;;  %1729 = vst [vmem:[#allocation7 + $0x1e0] sm:$0xff] %v1715_v0  ;;  %v1818_v2 = vadd.f32 1e-05, %v1815_v44  ;;  %v1965_v23 = vmul.f32 %v3822_v33, %v3822_v33  ;;  %v1967_v30 = vmul.f32 %v3827_v43, %v3827_v43  ;;  %v1968_v40 = vmul.f32 %v3814_v52, %v3814_v52  ;;  %v2577_v14 = vpop.f32.mrb[34].mxu0  ;;  %v2581_v0 = vpop.f32.mrb[34].mxu1 }
 0x162   :  { %1730 = vst [vmem:[#allocation7 + $0x230] sm:$0xff] %v1716_v48  ;;  %1731 = vst [vmem:[#allocation7 + $0x238] sm:$0xff] %v1717_v62  ;;  %v1960_v55 = vrot.slane %v1959_v37, 2  ;;  %v1081_v16 = vadd.f32 %v2542_v41, %v1017_v12  ;;  %2737 = vrsqrt.f32 %v1817_v50  ;;  %v1950_v11 = vrot.slane %v1949_v58, 1  ;;  %v1139_v1 = vpop.f32.mrb[35].mxu1  ;;  %v4300_v44 = vld [vmem:[#allocation13_spill] sm:$0xff] }
 0x163   :  { %2739 = vrsqrt.f32 %v1818_v2  ;;  %v1978_v25 = vadd.f32 %v1966_v5, %v1964_v32  ;;  %v1969_v24 = vmul.f32 %v3849_v57, %v3849_v57  ;;  %v1129_v49 = vadd.f32 %v2576_v34, %v3931_v38  ;;  %v1123_v38 = vpop.f32.mrb[35].mxu0  ;;  %v2141_v61 = vpop.permute.xlu1 %2140  ;;  %v4302_v32 = vld [vmem:[#allocation12_spill] sm:$0xff]  ;;  %v4303_v5 = vld [vmem:[#allocation14_spill] sm:$0xff] }
 0x164   :  { %v1961_v59 = vadd.f32 %v1960_v55, %v1959_v37  ;;  %v1970_v60 = vmul.f32 %v3837_v17, %v3837_v17  ;;  %v1990_v53 = vadd.f32 %v1967_v30, %v1965_v23  ;;  %v1145_v54 = vadd.f32 %v2580_v29, %v1081_v16 }
 0x165   :  { %v1979_v26 = vadd.f32 %v1978_v25, %v1968_v40  ;;  %v1121_v31 = vadd.f32 %v1120_v10, %v3900_v7  ;;  %v1951_v47 = vadd.f32 %v1950_v11, %v1949_v58  ;;  %v1137_v19 = vadd.f32 %v1136_v13, %v3964_v28  ;;  %v2147_v28 = vpop.permute.xlu0 %2146  ;;  %v4301_v58 = vld [vmem:[#allocation17_spill] sm:$0xff] }
 0x166   :  { %v1132_v4 = vadd.f32 %v2577_v14, %v3946_v36  ;;  %v1962_v48 = vrot.slane %v1961_v59, 1  ;;  %v3994_v51 = vsel %vm2155_vm0, %v1129_v49, %v2139_v42  ;;  %v1971_v22 = vmul.f32 %v3881_v20, %v3881_v20 }
 0x167   :  { %v1972_v7 = vmul.f32 %v3854_v9, %v3854_v9  ;;  %v1973_v62 = vmul.f32 %v3895_v45, %v3895_v45  ;;  %v4004_v36 = vsel %vm2155_vm0, %v1121_v31, %v3944_v6  ;;  %v1974_v8 = vmul.f32 %v4300_v44, %v4300_v44 }
 0x168   :  { %v1980_v41 = vadd.f32 %v1979_v26, %v1970_v60  ;;  %v1991_v56 = vadd.f32 %v1990_v53, %v1969_v24  ;;  %v1975_v37 = vmul.f32 %v4301_v58, %v4301_v58  ;;  %v1976_v12 = vmul.f32 %v4302_v32, %v4302_v32  ;;  %v2145_v53 = vpop.permute.xlu1 %2144 }
 0x169   :  { %v1977_v46 = vmul.f32 %v3938_v3, %v3938_v3  ;;  %v4014_v50 = vmul.f32 0.020408163, %v1951_v47  ;;  %v2167_v6 = vsel %vm2163_vm1, %v3994_v51, 0.0  ;;  %v1124_v55 = vadd.f32 %v1123_v38, %v4303_v5 }
 0x16a   :  { %v1140_v23 = vadd.f32 %v1139_v1, %v3968_v21  ;;  %v1963_v16 = vadd.f32 %v1962_v48, %v1961_v59  ;;  %v2185_v40 = vmul.f32 %v3994_v51, %v3994_v51  ;;  %v2183_v11 = vmul.f32 %v4004_v36, %v4004_v36 }
 0x16b   :  { %v4025_v42 = vsel %vm2155_vm0, %v1145_v54, %v2147_v28  ;;  %v4028_v25 = vsel %vm2155_vm0, %v1132_v4, %v2141_v61  ;;  %v4032_v34 = vsel %vm2155_vm0, %v1124_v55, %v3966_v35  ;;  %v1981_v21 = vadd.f32 %v1980_v41, %v1972_v7  ;;  %v4304_v54 = vld [vmem:[#allocation21_spill] sm:$0xff]  ;;  %v1816_v4 = vld [vmem:[#allocation2 + $0x6] sm:$0x3] }
 0x16c   :  { %v2738_v2 = vpop.eup %2737  ;;  %v1992_v59 = vadd.f32 %v1991_v56, %v1971_v22  ;;  %v2164_v49 = vsel %vm2163_vm1, %v4004_v36, 0.0  ;;  %v4037_v29 = vsel %vm2155_vm0, %v1137_v19, %v2143_v18  ;;  %v2165_v10 = vsel %vm2163_vm1, %v4032_v34, 0.0 }
 0x16d   :  { %v2740_v30 = vpop.eup %2739  ;;  %v2184_v60 = vmul.f32 %v4032_v34, %v4032_v34  ;;  %v2166_v26 = vadd.f32 %v2165_v10, %v2164_v49  ;;  %v1982_v31 = vadd.f32 %v1981_v21, %v1974_v8  ;;  %v2193_v14 = vsel %vm2163_vm1, %v2185_v40, 0.0 }
 0x16e   :  { %v1823_v24 = vcombine.low %v2738_v2, %v2740_v30  ;;  %v1993_v13 = vadd.f32 %v1992_v59, %v1973_v62  ;;  %v2190_v47 = vsel %vm2163_vm1, %v2183_v11, 0.0  ;;  %v2186_v18 = vmul.f32 %v4028_v25, %v4028_v25  ;;  %v4306_v59 = vld [vmem:[#allocation15_spill] sm:$0xff] }
 0x16f   :  { %v2191_v19 = vsel %vm2163_vm1, %v2184_v60, 0.0  ;;  %v2168_v0 = vadd.f32 %v2167_v6, %v2166_v26  ;;  %v1983_v1 = vadd.f32 %v1982_v31, %v1976_v12  ;;  %v2171_v22 = vsel %vm2163_vm1, %v4037_v29, 0.0 }
 0x170   :  { %v1830_v35 = vrot.slane %v1823_v24, %v4304_v54  ;;  %v2192_v38 = vadd.f32 %v2191_v19, %v2190_v47  ;;  %v2169_v7 = vsel %vm2163_vm1, %v4028_v25, 0.0  ;;  %v1994_v62 = vadd.f32 %v1993_v13, %v1975_v37  ;;  %v4305_v24 = vld [vmem:[#allocation11_spill] sm:$0xff] }
 0x171   :  { %v4055_v61 = vsel %vm2155_vm0, %v1140_v23, %v2145_v53  ;;  %v1984_v41 = vrot.slane %v1983_v1, 4  ;;  %v2170_v56 = vadd.f32 %v2169_v7, %v2168_v0  ;;  %v2187_v2 = vmul.f32 %v4037_v29, %v4037_v29 }
 0x172   :  { %v1837_v48 = vrot.slane %v1830_v35, %v4304_v54  ;;  %v2194_v28 = vadd.f32 %v2193_v14, %v2192_v38  ;;  %v2189_v12 = vmul.f32 %v4025_v42, %v4025_v42  ;;  %v2195_v6 = vsel %vm2163_vm1, %v2186_v18, 0.0  ;;  %v2747_v14 = vld [vmem:[%s4184_s2 + $0x30] sm:$0xff]  ;;  %v2748_v18 = vld [vmem:[%s4184_s2 + $0x38] sm:$0xff] }
 0x173   :  { %v1995_v5 = vadd.f32 %v1994_v62, %v1977_v46  ;;  %v4064_v30 = vmul.f32 0.020408163, %v1963_v16  ;;  %v2172_v23 = vadd.f32 %v2171_v22, %v2170_v56  ;;  %v2188_v40 = vmul.f32 %v4055_v61, %v4055_v61  ;;  %v4307_v56 = vld [vmem:[#allocation39_spill] sm:$0xff] }
 0x174   :  { %v1839_v8 = vmul.f32 %v1837_v48, %v1816_v4  ;;  %v2196_v11 = vadd.f32 %v2195_v6, %v2194_v28  ;;  %v1985_v10 = vadd.f32 %v1984_v41, %v1983_v1  ;;  %v2197_v26 = vsel %vm2163_vm1, %v2187_v2, 0.0  ;;  %v2749_v4 = vld [vmem:[%s4184_s2 + $0x80] sm:$0xff]  ;;  %v2750_v1 = vld [vmem:[%s4184_s2 + $0x88] sm:$0xff]  ;;  %v1840_v28 = vld [vmem:[#allocation5 + $0x6] sm:$0x3] }
 0x175   :  { %v1996_v60 = vrot.slane %v1995_v5, 4  ;;  %v2175_v46 = vsel %vm2163_vm1, %v4025_v42, 0.0  ;;  %v4075_v16 = vmul.f32 %v4014_v50, %v4014_v50  ;;  %v2201_v53 = vsel %vm2163_vm1, %v2189_v12, 0.0 }
 0x176   :  { %v1845_v55 = vrot.slane %v1839_v8, %v3450_v15  ;;  %v1849_v37 = vrot.slane %v1839_v8, %v3452_v27  ;;  %v4080_v31 = vmul.f32 %v4064_v30, %v4064_v30  ;;  %v2173_v13 = vsel %vm2163_vm1, %v4055_v61, 0.0  ;;  %v2751_v8 = vld [vmem:[%s4184_s2 + $0xd0] sm:$0xff] }
 0x177   :  { %v2199_v38 = vsel %vm2163_vm1, %v2188_v40, 0.0  ;;  %v1986_v7 = vrot.slane %v1985_v10, 2  ;;  %v1997_v62 = vadd.f32 %v1996_v60, %v1995_v5  ;;  %v2174_v12 = vadd.f32 %v2173_v13, %v2172_v23  ;;  %v4308_v5 = vld [vmem:[#allocation41_spill] sm:$0xff] }
 0x178   :  { %v1852_v21 = vmul.f32 %v1845_v55, %v4305_v24  ;;  %v1853_v49 = vmul.f32 %v1849_v37, %v4306_v59  ;;  %v1873_v47 = vmul.f32 %v2747_v14, %v1845_v55  ;;  %v1874_v19 = vmul.f32 %v2748_v18, %v1849_v37  ;;  %v2752_v24 = vld [vmem:[%s4184_s2 + $0x120] sm:$0xff] }
 0x179   :  { %v1875_v0 = vmul.f32 %v2749_v4, %v1845_v55  ;;  %v1876_v22 = vmul.f32 %v2750_v1, %v1849_v37  ;;  %v1877_v41 = vmul.f32 %v2751_v8, %v1845_v55  ;;  %v1878_v2 = vmul.f32 %v1849_v37, %v4307_v56  ;;  %v2754_v1 = vld [vmem:[%s4184_s2 + $0x1c0] sm:$0xff] }
 0x17a   :  { %v1856_v35 = vcombine.low %v1852_v21, %v1853_v49  ;;  %v2198_v6 = vadd.f32 %v2197_v26, %v2196_v11  ;;  %v1879_v21 = vmul.f32 %v2752_v24, %v1845_v55  ;;  %v1987_v59 = vadd.f32 %v1986_v7, %v1985_v10  ;;  %v4309_v11 = vld [vmem:[#allocation42_spill] sm:$0xff]  ;;  %v4310_v7 = vld [vmem:[#allocation43_spill] sm:$0xff] }
 0x17b   :  { %v1998_v49 = vrot.slane %v1997_v62, 2  ;;  %v1880_v60 = vmul.f32 %v1849_v37, %v4308_v5  ;;  %v2176_v18 = vadd.f32 %v2175_v46, %v2174_v12  ;;  %v1882_v26 = vmul.f32 %v1849_v37, %v4309_v11  ;;  %v2755_v5 = vld [vmem:[%s4184_s2 + $0x210] sm:$0xff] }
 0x17c   :  { %v1863_v48 = vrot.slane %v1856_v35, %v4304_v54  ;;  %v2753_v35 = vld [vmem:[%s4184_s2 + $0x170] sm:$0xff]  ;;  %v2200_v4 = vadd.f32 %v2199_v38, %v2198_v6  ;;  %v1988_v13 = vrot.slane %v1987_v59, 1  ;;  %v1883_v10 = vmul.f32 %v2754_v1, %v1845_v55  ;;  %v4311_v38 = vld [vmem:[#allocation44_spill] sm:$0xff]  ;;  %s2832_s2 = smov [#allocation7]  }
 0x17d   :  { %v1881_v14 = vmul.f32 %v2753_v35, %v1845_v55  ;;  %v1884_v8 = vmul.f32 %v1849_v37, %v4310_v7  ;;  %v2177_v56 = vrot.slane %v2176_v18, 4  ;;  %v1885_v46 = vmul.f32 %v2755_v5, %v1845_v55  ;;  %s2265_s21 = sshll.u32 %s2832_s2, 4  ;;  %s4157_s21 = int_to_ptr.vmem [resolvable:$true] %s2265_s21 }
 0x17e   :  { %v1870_v40 = vrot.slane %v1863_v48, %v4304_v54  ;;  %v1999_v48 = vadd.f32 %v1998_v49, %v1997_v62  ;;  %v2202_v24 = vadd.f32 %v2201_v53, %v2200_v4  ;;  %v1989_v6 = vadd.f32 %v1988_v13, %v1987_v59  ;;  %s2800_s22 = scalar_lea.vmem %s4157_s21, 9856  ;;  %p2805_p3 = scmp.lt.s32.totalorder %s4157_s21, %s4157_s21 }
 0x17f   :  { %v2178_v49 = vadd.f32 %v2177_v56, %v2176_v18  ;;  %p2801_p2 = scmp.ne.s32.totalorder %s4157_s21, %s2800_s22  ;;  %p2806_p4 = scmp.lt.s32.totalorder %s2800_s22, %s2800_s22 }
 0x180   :  { %v1872_v23 = vsub.f32 %v1840_v28, %v1870_v40  ;;  %v1886_v28 = vmul.f32 %v1849_v37, %v4311_v38  ;;  %v2000_v40 = vrot.slane %v1999_v48, 1  ;;  %v2203_v35 = vrot.slane %v2202_v24, 4 }
 0x181   :  { %p2807_p5 = por %p2806_p4, %p2805_p3 }
 0x182   :  { %v1891_v12 = vrot.slane %v1872_v23, %v3450_v15  ;;  %v1895_v62 = vrot.slane %v1872_v23, %v3452_v27 }
 0x183   :  { %p2808_p6 = pnand %p2807_p5, %p2801_p2 }
 0x184   :  { %v1898_v11 = vadd.f32 %v1891_v12, %v1873_v47  ;;  %v1899_v1 = vadd.f32 %v1895_v62, %v1874_v19  ;;  %v1900_v7 = vadd.f32 %v1891_v12, %v1875_v0  ;;  %v1901_v3 = vadd.f32 %v1895_v62, %v1876_v22 }
 0x185   :  { %v1902_v53 = vadd.f32 %v1891_v12, %v1877_v41  ;;  %v1903_v4 = vadd.f32 %v1895_v62, %v1878_v2  ;;  %v1904_v32 = vadd.f32 %v1891_v12, %v1879_v21  ;;  %v1905_v58 = vadd.f32 %v1895_v62, %v1880_v60 }
 0x186   :  { %v1906_v44 = vadd.f32 %v1891_v12, %v1881_v14  ;;  %v1907_v55 = vadd.f32 %v1895_v62, %v1882_v26  ;;  %v1908_v5 = vadd.f32 %v1891_v12, %v1883_v10  ;;  %v1909_v37 = vadd.f32 %v1895_v62, %v1884_v8  ;;  %1912 = vst [vmem:[#allocation7 + $0x30] sm:$0xff] %v1898_v11 }
 0x187   :  { %1913 = vst [vmem:[#allocation7 + $0x38] sm:$0xff] %v1899_v1  ;;  %1914 = vst [vmem:[#allocation7 + $0x88] sm:$0xff] %v1900_v7  ;;  %v1910_v59 = vadd.f32 %v1891_v12, %v1885_v46  ;;  %v1911_v23 = vadd.f32 %v1895_v62, %v1886_v28  ;;  %v2001_v47 = vadd.f32 %v2000_v40, %v1999_v48  ;;  %v2004_v19 = vmul.f32 0.020408163, %v1989_v6  ;;  %v2010_v28 = vld [vmem:[#allocation2 + $0x8] sm:$0x3] }
 0x188   :  { %1915 = vst [vmem:[#allocation7 + $0x90] sm:$0xff] %v1901_v3  ;;  %1916 = vst [vmem:[#allocation7 + $0xe0] sm:$0xff] %v1902_v53  ;;  %v2179_v0 = vrot.slane %v2178_v49, 2  ;;  %v2204_v22 = vadd.f32 %v2203_v35, %v2202_v24  ;;  %v2213_v6 = vld [vmem:[#allocation2 + $0xa] sm:$0x1] }
 0x189   :  { %1917 = vst [vmem:[#allocation7 + $0xe8] sm:$0xff] %v1903_v4  ;;  %1918 = vst [vmem:[#allocation7 + $0x138] sm:$0xff] %v1904_v32  ;;  %v2005_v41 = vmul.f32 0.020408163, %v2001_v47  ;;  %v2008_v2 = vsub.f32 %v2004_v19, %v4075_v16  ;;  %v2217_v4 = vld [vmem:[#allocation5 + $0xa] sm:$0x1] }
 0x18a   :  { %1919 = vst [vmem:[#allocation7 + $0x140] sm:$0xff] %v1905_v58  ;;  %1920 = vst [vmem:[#allocation7 + $0x190] sm:$0xff] %v1906_v44  ;;  %v2180_v3 = vadd.f32 %v2179_v0, %v2178_v49  ;;  %v2205_v21 = vrot.slane %v2204_v22, 2  ;;  %v2034_v0 = vld [vmem:[#allocation5 + $0x8] sm:$0x3] }
 0x18b   :  { %1921 = vst [vmem:[#allocation7 + $0x198] sm:$0xff] %v1907_v55  ;;  %1922 = vst [vmem:[#allocation7 + $0x1e8] sm:$0xff] %v1908_v5  ;;  %v2009_v60 = vsub.f32 %v2005_v41, %v4080_v31  ;;  %v2011_v14 = vadd.f32 1e-05, %v2008_v2 }
 0x18c   :  { %1923 = vst [vmem:[#allocation7 + $0x1f0] sm:$0xff] %v1909_v37  ;;  %1924 = vst [vmem:[#allocation7 + $0x240] sm:$0xff] %v1910_v59  ;;  %v2181_v32 = vrot.slane %v2180_v3, 1  ;;  %v2206_v58 = vadd.f32 %v2205_v21, %v2204_v22 }
 0x18d   :  { %1925 = vst [vmem:[#allocation7 + $0x248] sm:$0xff] %v1911_v23  ;;  %v2012_v18 = vadd.f32 1e-05, %v2009_v60  ;;  %2741 = vrsqrt.f32 %v2011_v14  ;;  %v4312_v60 = vld [vmem:[#allocation13_spill] sm:$0xff] }
 0x18e   :  { %v2182_v44 = vadd.f32 %v2181_v32, %v2180_v3  ;;  %v2207_v26 = vrot.slane %v2206_v58, 1 }
 0x18f   :  { %2743 = vrsqrt.f32 %v2012_v18 }
 0x190   :  { %v2208_v13 = vadd.f32 %v2207_v26, %v2206_v58  ;;  %v2209_v48 = vmul.f32 0.020408163, %v2182_v44 }
 0x192   :  { %v2210_v10 = vmul.f32 0.020408163, %v2208_v13  ;;  %v2211_v8 = vmul.f32 %v2209_v48, %v2209_v48 }
 0x194   :  { %v2212_v56 = vsub.f32 %v2210_v10, %v2211_v8 }
 0x196   :  { %v2214_v24 = vadd.f32 1e-05, %v2212_v56 }
 0x197   :  { %v2742_v46 = vpop.eup %2741 }
 0x198   :  { %2745 = vrsqrt.f32 %v2214_v24 }
 0x199   :  { %v2744_v16 = vpop.eup %2743 }
 0x19a   :  { %v2017_v38 = vcombine.low %v2742_v46, %v2744_v16 }
 0x19c   :  { %v2024_v31 = vrot.slane %v2017_v38, %v4304_v54 }
 0x19e   :  { %v2031_v12 = vrot.slane %v2024_v31, %v4304_v54 }
 0x1a0   :  { %v2033_v62 = vmul.f32 %v2031_v12, %v2010_v28 }
 0x1a2   :  { %v2746_v40 = vpop.eup %2745  ;;  %v2039_v49 = vrot.slane %v2033_v62, %v3450_v15  ;;  %v2043_v35 = vrot.slane %v2033_v62, %v3452_v27 }
 0x1a3   :  { %v2216_v7 = vmul.f32 %v2746_v40, %v2213_v6 }
 0x1a4   :  { %v2046_v11 = vmul.f32 %v2039_v49, %v4014_v50  ;;  %v2047_v1 = vmul.f32 %v2043_v35, %v4064_v30  ;;  %v2067_v55 = vmul.f32 %v2039_v49, %v3797_v39  ;;  %v2068_v5 = vmul.f32 %v2043_v35, %v3822_v33 }
 0x1a5   :  { %v2069_v37 = vmul.f32 %v2039_v49, %v3802_v63  ;;  %v2070_v59 = vmul.f32 %v2043_v35, %v3827_v43  ;;  %v2071_v47 = vmul.f32 %v2039_v49, %v3814_v52  ;;  %v2218_v19 = vmul.f32 %v2216_v7, %v2209_v48 }
 0x1a6   :  { %v2050_v53 = vcombine.low %v2046_v11, %v2047_v1  ;;  %v2224_v50 = vrot.slane %v2216_v7, %v3450_v15  ;;  %v2072_v30 = vmul.f32 %v2043_v35, %v3849_v57  ;;  %v2073_v22 = vmul.f32 %v2039_v49, %v3837_v17 }
 0x1a7   :  { %v2074_v39 = vmul.f32 %v2043_v35, %v3881_v20  ;;  %v2075_v33 = vmul.f32 %v2039_v49, %v3854_v9  ;;  %v2219_v41 = vsub.f32 %v2217_v4, %v2218_v19  ;;  %v2076_v20 = vmul.f32 %v2043_v35, %v3895_v45 }
 0x1a8   :  { %v2057_v23 = vrot.slane %v2050_v53, %v4304_v54  ;;  %v2226_v43 = vmul.f32 %v2224_v50, %v4004_v36  ;;  %v2227_v2 = vmul.f32 %v2224_v50, %v4032_v34  ;;  %v2228_v52 = vmul.f32 %v2224_v50, %v3994_v51  ;;  %v4313_v36 = vld [vmem:[#allocation17_spill] sm:$0xff]  ;;  %v4314_v34 = vld [vmem:[#allocation12_spill] sm:$0xff] }
 0x1a9   :  { %v2229_v3 = vmul.f32 %v2224_v50, %v4028_v25  ;;  %v2230_v21 = vmul.f32 %v2224_v50, %v4037_v29  ;;  %v2231_v57 = vmul.f32 %v2224_v50, %v4055_v61  ;;  %v2232_v9 = vmul.f32 %v2224_v50, %v4025_v42  ;;  %v4315_v51 = vld [vmem:[#allocation16_spill] sm:$0xff] }
 0x1aa   :  { %v2064_v63 = vrot.slane %v2057_v23, %v4304_v54  ;;  %v2237_v54 = vrot.slane %v2219_v41, %v3450_v15  ;;  %v2077_v14 = vmul.f32 %v2039_v49, %v4312_v60  ;;  %v2078_v32 = vmul.f32 %v2043_v35, %v4313_v36 }
 0x1ab   :  { %v2079_v58 = vmul.f32 %v2039_v49, %v4314_v34  ;;  %v2080_v18 = vmul.f32 %v2043_v35, %v4315_v51 }
 0x1ac   :  { %v2066_v17 = vsub.f32 %v2034_v0, %v2064_v63  ;;  %v2239_v61 = vadd.f32 %v2237_v54, %v2226_v43  ;;  %v2240_v44 = vadd.f32 %v2237_v54, %v2227_v2  ;;  %v2241_v26 = vadd.f32 %v2237_v54, %v2228_v52 }
 0x1ad   :  { %v2242_v45 = vadd.f32 %v2237_v54, %v2229_v3  ;;  %v2243_v13 = vadd.f32 %v2237_v54, %v2230_v21  ;;  %v2244_v42 = vadd.f32 %v2237_v54, %v2231_v57  ;;  %v2245_v6 = vadd.f32 %v2237_v54, %v2232_v9 }
 0x1ae   :  { %v2085_v25 = vrot.slane %v2066_v17, %v3450_v15  ;;  %v2089_v29 = vrot.slane %v2066_v17, %v3452_v27  ;;  %v2246_v40 = vsel %vm2163_vm1, %v2239_v61, 0.0  ;;  %v2247_v49 = vsel %vm2163_vm1, %v2240_v44, 0.0 }
 0x1af   :  { %v2248_v35 = vsel %vm2163_vm1, %v2241_v26, 0.0  ;;  %v2249_v11 = vsel %vm2163_vm1, %v2242_v45, 0.0  ;;  %v2250_v1 = vsel %vm2163_vm1, %v2243_v13, 0.0  ;;  %2253 = vst [vmem:[#allocation7 + $0x50] sm:$0xff] %v2246_v40  ;;  %v2251_v7 = vsel %vm2163_vm1, %v2244_v42, 0.0  ;;  %2254 = vst [vmem:[#allocation7 + $0xa8] sm:$0xff] %v2247_v49 }
 0x1b0   :  { %v2092_v48 = vadd.f32 %v2085_v25, %v2067_v55  ;;  %v2093_v10 = vadd.f32 %v2089_v29, %v2068_v5  ;;  %v2094_v8 = vadd.f32 %v2085_v25, %v2069_v37  ;;  %v2095_v56 = vadd.f32 %v2089_v29, %v2070_v59  ;;  %2255 = vst [vmem:[#allocation7 + $0x100] sm:$0xff] %v2248_v35 }
 0x1b1   :  { %v2096_v24 = vadd.f32 %v2085_v25, %v2071_v47  ;;  %v2097_v46 = vadd.f32 %v2089_v29, %v2072_v30  ;;  %v2098_v16 = vadd.f32 %v2085_v25, %v2073_v22  ;;  %v2099_v38 = vadd.f32 %v2089_v29, %v2074_v39  ;;  %2256 = vst [vmem:[#allocation7 + $0x158] sm:$0xff] %v2249_v11 }
 0x1b2   :  { %v2100_v31 = vadd.f32 %v2085_v25, %v2075_v33  ;;  %v2101_v15 = vadd.f32 %v2089_v29, %v2076_v20  ;;  %v2102_v28 = vadd.f32 %v2085_v25, %v2077_v14  ;;  %v2103_v27 = vadd.f32 %v2089_v29, %v2078_v32  ;;  %2106 = vst [vmem:[#allocation7 + $0x40] sm:$0xff] %v2092_v48 }
 0x1b3   :  { %2107 = vst [vmem:[#allocation7 + $0x48] sm:$0xff] %v2093_v10  ;;  %2108 = vst [vmem:[#allocation7 + $0x98] sm:$0xff] %v2094_v8  ;;  %v2104_v12 = vadd.f32 %v2085_v25, %v2079_v58  ;;  %v2105_v62 = vadd.f32 %v2089_v29, %v2080_v18  ;;  %v2252_v53 = vsel %vm2163_vm1, %v2245_v6, 0.0 }
 0x1b4   :  { %2109 = vst [vmem:[#allocation7 + $0xa0] sm:$0xff] %v2095_v56  ;;  %2110 = vst [vmem:[#allocation7 + $0xf0] sm:$0xff] %v2096_v24 }
 0x1b5   :  { %2111 = vst [vmem:[#allocation7 + $0xf8] sm:$0xff] %v2097_v46  ;;  %2112 = vst [vmem:[#allocation7 + $0x148] sm:$0xff] %v2098_v16 }
 0x1b6   :  { %2113 = vst [vmem:[#allocation7 + $0x150] sm:$0xff] %v2099_v38  ;;  %2114 = vst [vmem:[#allocation7 + $0x1a0] sm:$0xff] %v2100_v31 }
 0x1b7   :  { %2115 = vst [vmem:[#allocation7 + $0x1a8] sm:$0xff] %v2101_v15  ;;  %2116 = vst [vmem:[#allocation7 + $0x1f8] sm:$0xff] %v2102_v28 }
 0x1b8   :  { %2117 = vst [vmem:[#allocation7 + $0x200] sm:$0xff] %v2103_v27  ;;  %2118 = vst [vmem:[#allocation7 + $0x250] sm:$0xff] %v2104_v12 }
 0x1b9   :  { %2119 = vst [vmem:[#allocation7 + $0x258] sm:$0xff] %v2105_v62  ;;  %2257 = vst [vmem:[#allocation7 + $0x1b0] sm:$0xff] %v2250_v1 }
 0x1ba   :  { %2258 = vst [vmem:[#allocation7 + $0x208] sm:$0xff] %v2251_v7  ;;  %2259 = vst [vmem:[#allocation7 + $0x260] sm:$0xff] %v2252_v53 }
 0x1bb   :  { %2811 = shalt.err (!%p2808_p6)
}
 0x1bc   :  { %s2812_s26 = scalar_lea.hbm %s4188_s6, 9856 }
 0x1bd   :  { %p2813_p7 = scmp.ne.s32.totalorder %s4188_s6, %s2812_s26  ;;  %p2816_p8 = scmp.lt.u32.totalorder %s2812_s26, %s4188_s6 }
 0x1bf   :  { %p2818_p9 = pnand %p2816_p8, %p2813_p7 }
 0x1c1   :  { %2821 = shalt.err (!%p2818_p9)
}
 0x1c2   :  { %s2833_s5 = smov 1408   ;;  %s2834_s24 = smov 88  }
 0x1c3   :  { %2271 = dma.vmem_to_hbm [thread:$0]  %s4157_s21, 9856, %s4188_s6, [#allocation4], %s2833_s5, %s2833_s5, %s2834_s24  }
 0x1c4   :  { %2826 = dma.done.wait [#allocation4], 9856  }
 0x1c5   :  { %2827 = vsyncadd [#allocation4], 4294957440 }
 0x1c6   :  { %2275 = vsyncpa [#allocation3], 1 }
 0x1c7   :  { %2276 = vsyncpa [#allocation6], 1 }
 0x1c8   :  { %2277 = vsyncpa [#allocation4], 1 }

</bundles_post_ra>
